<compile_context>
chip_gen: v6e
topology: v6e:2x2x1
jax: 0.10.0
libtpu: 0.0.40
codegen_flags: <defaults>
</compile_context>

<pallas_src>
import functools
import math

import jax
import jax.numpy as jnp
from jax.experimental import pallas as pl
from jax.experimental.pallas import tpu as pltpu


def _autoencoder_kernel(act_flags, mxu_dtype, *refs):
    """refs = (x_ref, w0, b0, w1, b1, ..., out_ref).

    act_flags[i] == True -> apply sigmoid after linear layer i.
    mxu_dtype             -> operand dtype fed to the MXU (bf16).
    """
    x_ref = refs[0]
    out_ref = refs[-1]
    param_refs = refs[1:-1]
    n_layers = len(param_refs) // 2

    h = x_ref[...]                           # (tile, d_in), already mxu_dtype
    for i in range(n_layers):
        w_ref = param_refs[2 * i]            # (d_in, d_out), mxu_dtype, VMEM-resident
        b_ref = param_refs[2 * i + 1]        # (1, d_out),    f32,       VMEM-resident
        # bf16 x bf16 -> f32 accumulate on the MXU.
        acc = jnp.dot(h, w_ref[...], preferred_element_type=jnp.float32)
        acc = acc + b_ref[...]               # f32 bias, broadcast over batch rows
        if act_flags[i]:
            # sigmoid in f32: exp + approximate reciprocal both run on the EUP.
            acc = pl.reciprocal(1.0 + jnp.exp(-acc), approx=True)
        # Keep MXU operands narrow for the next layer; last layer stays f32.
        h = acc if i == n_layers - 1 else acc.astype(mxu_dtype)
    out_ref[...] = h.astype(out_ref.dtype)


def make_autoencoder_params(key, input_dim, hidden_sizes, latent_dim,
                            w_dtype=jnp.bfloat16, b_dtype=jnp.float32):
    """Params mirroring PyTorch nn.Linear init (uniform +/- 1/sqrt(fan_in)).

    Returns a list of (W, b, apply_sigmoid) with W transposed to (in, out),
    ordered as the full forward chain: encoder layers then decoder layers.
    Weights stored in bf16 (MXU operand dtype), biases in f32.
    """
    enc_dims = [input_dim] + list(hidden_sizes) + [latent_dim]
    dec_dims = [latent_dim] + list(hidden_sizes[::-1]) + [input_dim]

    def build_chain(key, dims):
        layers = []
        for i in range(len(dims) - 1):
            d_in, d_out = dims[i], dims[i + 1]
            key, kw, kb = jax.random.split(key, 3)
            bound = 1.0 / math.sqrt(d_in)
            w = jax.random.uniform(kw, (d_in, d_out), jnp.float32, -bound, bound)
            b = jax.random.uniform(kb, (1, d_out), jnp.float32, -bound, bound)
            apply_sig = i < len(dims) - 2  # sigmoid after all but the last linear
            layers.append((w.astype(w_dtype), b.astype(b_dtype), apply_sig))
        return key, layers

    key, enc_layers = build_chain(key, enc_dims)
    key, dec_layers = build_chain(key, dec_dims)
    return enc_layers + dec_layers


def _round_up(n, m):
    return ((n + m - 1) // m) * m


def _choose_batch_tile(batch, max_tile=512):
    """Pick (tile, padded_batch): tile is a multiple of 8, <= max_tile, and the
    grid length is >= 2 whenever possible (megacore / v7x dual-TC)."""
    padded = _round_up(batch, 8)
    tile = min(max_tile, padded)
    padded = _round_up(padded, tile)
    if padded // tile == 1 and tile % 16 == 0:
        tile //= 2                          # keep >= 2 parallel grid steps
    return tile, padded


def autoencoder_forward(x, layers, *, max_batch_tile=512):
    """Runs the full encoder+decoder chain in a single Pallas kernel."""
    B, input_dim = x.shape
    out_dim = layers[-1][0].shape[1]
    assert out_dim == input_dim  # autoencoder reconstructs input_dim

    mxu_dtype = layers[0][0].dtype
    act_flags = tuple(bool(a) for (_, _, a) in layers)
    params = []
    for (w, b, _) in layers:
        params.extend([w, b])

    tile, padded_b = _choose_batch_tile(B, max_batch_tile)
    xp = x.astype(mxu_dtype)
    if padded_b != B:
        xp = jnp.pad(xp, ((0, padded_b - B), (0, 0)))

    # x / out tiled over batch only (feature dim = full array last dim, so the
    # (8,128) rule is satisfied by construction).
    x_spec = pl.BlockSpec((tile, input_dim), lambda i: (i, 0))
    out_spec = pl.BlockSpec((tile, out_dim), lambda i: (i, 0))
    # Weights/biases are tiny: keep them fully VMEM-resident for the whole grid
    # (no per-step DMA, no second pipeline buffer).
    param_specs = [pl.BlockSpec(memory_space=pltpu.MemorySpace.VMEM)
                   for _ in params]

    kernel = functools.partial(_autoencoder_kernel, act_flags, mxu_dtype)

    out = pl.pallas_call(
        kernel,
        out_shape=jax.ShapeDtypeStruct((padded_b, out_dim), x.dtype),
        grid_spec=pltpu.PrefetchScalarGridSpec(
            num_scalar_prefetch=0,
            grid=(padded_b // tile,),
            in_specs=[x_spec] + param_specs,
            out_specs=out_spec,
        ),
        compiler_params=pltpu.CompilerParams(
            dimension_semantics=("parallel",),
            # Explicit budget: a 512-row tile (in+out, double-buffered) plus all
            # params is well under 32 MiB on every generation (v7x: 64 MiB phys).
            vmem_limit_bytes=32 * 1024 * 1024,
        ),
    )(xp, *params)

    return out if padded_b == B else out[:B]


def autoencoder_reference(x, layers):
    """Pure-JAX reference mirroring the kernel's dtype handling
    (bf16 MXU operands, f32 accumulate/bias/sigmoid), but exact sigmoid."""
    mxu_dtype = layers[0][0].dtype
    n = len(layers)
    h = x.astype(mxu_dtype)
    for i, (w, b, apply_sig) in enumerate(layers):
        acc = jnp.dot(h, w, preferred_element_type=jnp.float32) + b.astype(jnp.float32)
        if apply_sig:
            acc = jax.nn.sigmoid(acc)
        h = acc if i == n - 1 else acc.astype(mxu_dtype)
    return h.astype(x.dtype)


if __name__ == "__main__":
    # Shapes consistent with the module:
    #   AutoEncoder(input_dim=128, hidden_sizes=[64, 32], latent_dim=16)
    input_dim = 128
    hidden_sizes = [64, 32]
    latent_dim = 16

    key = jax.random.PRNGKey(0)
    key, kx = jax.random.split(key)
    layers = make_autoencoder_params(key, input_dim, hidden_sizes, latent_dim)

    # batch=512 -> tile 256, grid of 2 parallel steps (exercises megacore path);
    # batch=20  -> padded to 24 rows, single step (exercises the padding path).
    for batch in (512, 20):
        kx, kb = jax.random.split(kx)
        x = jax.random.normal(kb, (batch, input_dim), jnp.float32)

        x_hat = jax.block_until_ready(autoencoder_forward(x, layers))
        ref = autoencoder_reference(x, layers)

        assert x_hat.shape == (batch, input_dim)
        err = jnp.abs(x_hat.astype(jnp.float32) - ref.astype(jnp.float32))
        # Kernel uses bf16 MXU operands + EUP approximate reciprocal in the
        # sigmoid, so agreement is at bf16 level rather than f32-exact.
        assert float(err.max()) < 2e-2, f"max abs err {float(err.max())}"
        assert float(err.mean()) < 3e-3, f"mean abs err {float(err.mean())}"

    print("KERNEL_OK")
</pallas_src>

<mosaic_0001>
module attributes {stable_mosaic.version = 11 : i64} {
  func.func @_autoencoder_kernel(%arg0: i32, %arg1: memref<256x128xbf16, #tpu.memory_space<vmem>>, %arg2: memref<128x64xbf16, #tpu.memory_space<vmem>>, %arg3: memref<1x64xf32, #tpu.memory_space<vmem>>, %arg4: memref<64x32xbf16, #tpu.memory_space<vmem>>, %arg5: memref<1x32xf32, #tpu.memory_space<vmem>>, %arg6: memref<32x16xbf16, #tpu.memory_space<vmem>>, %arg7: memref<1x16xf32, #tpu.memory_space<vmem>>, %arg8: memref<16x32xbf16, #tpu.memory_space<vmem>>, %arg9: memref<1x32xf32, #tpu.memory_space<vmem>>, %arg10: memref<32x64xbf16, #tpu.memory_space<vmem>>, %arg11: memref<1x64xf32, #tpu.memory_space<vmem>>, %arg12: memref<64x128xbf16, #tpu.memory_space<vmem>>, %arg13: memref<1x128xf32, #tpu.memory_space<vmem>>, %arg14: memref<256x128xf32, #tpu.memory_space<vmem>>) attributes {dimension_semantics = [#tpu.dimension_semantics<parallel>], iteration_bounds = array<i64: 2>, scalar_prefetch = 0 : i64, scratch_operands = 0 : i64, tpu.core_type = #tpu.core_type<tc>, window_params = [{transform_indices = @transform_0, window_bounds = array<i64: 256, 128>}, {pipeline_mode = #tpu.pipeline_mode<synchronous>, transform_indices = @transform_1, window_bounds = array<i64: 128, 64>}, {pipeline_mode = #tpu.pipeline_mode<synchronous>, transform_indices = @transform_2, window_bounds = array<i64: 1, 64>}, {pipeline_mode = #tpu.pipeline_mode<synchronous>, transform_indices = @transform_3, window_bounds = array<i64: 64, 32>}, {pipeline_mode = #tpu.pipeline_mode<synchronous>, transform_indices = @transform_4, window_bounds = array<i64: 1, 32>}, {pipeline_mode = #tpu.pipeline_mode<synchronous>, transform_indices = @transform_5, window_bounds = array<i64: 32, 16>}, {pipeline_mode = #tpu.pipeline_mode<synchronous>, transform_indices = @transform_6, window_bounds = array<i64: 1, 16>}, {pipeline_mode = #tpu.pipeline_mode<synchronous>, transform_indices = @transform_7, window_bounds = array<i64: 16, 32>}, {pipeline_mode = #tpu.pipeline_mode<synchronous>, transform_indices = @transform_8, window_bounds = array<i64: 1, 32>}, {pipeline_mode = #tpu.pipeline_mode<synchronous>, transform_indices = @transform_9, window_bounds = array<i64: 32, 64>}, {pipeline_mode = #tpu.pipeline_mode<synchronous>, transform_indices = @transform_10, window_bounds = array<i64: 1, 64>}, {pipeline_mode = #tpu.pipeline_mode<synchronous>, transform_indices = @transform_11, window_bounds = array<i64: 64, 128>}, {pipeline_mode = #tpu.pipeline_mode<synchronous>, transform_indices = @transform_12, window_bounds = array<i64: 1, 128>}, {transform_indices = @transform_13, window_bounds = array<i64: 256, 128>}]} {
    %c0 = arith.constant 0 : index
    %c0_0 = arith.constant 0 : index
    %0 = vector.load %arg1[%c0, %c0_0] : memref<256x128xbf16, #tpu.memory_space<vmem>>, vector<256x128xbf16>
    %c0_1 = arith.constant 0 : index
    %c0_2 = arith.constant 0 : index
    %1 = vector.load %arg2[%c0_1, %c0_2] : memref<128x64xbf16, #tpu.memory_space<vmem>>, vector<128x64xbf16>
    %cst = arith.constant dense<0.000000e+00> : vector<256x64xf32>
    %2 = tpu.matmul %0, %1, %cst {dimension_numbers = #tpu.dot_dimension_numbers<[1], [0], [0], [1], [0, 0, 1, 1], [], []>} : vector<256x128xbf16>, vector<128x64xbf16>, vector<256x64xf32> -> vector<256x64xf32>
    %c0_3 = arith.constant 0 : index
    %c0_4 = arith.constant 0 : index
    %3 = vector.load %arg3[%c0_3, %c0_4] : memref<1x64xf32, #tpu.memory_space<vmem>>, vector<1x64xf32>
    %4 = vector.broadcast %3 : vector<1x64xf32> to vector<256x64xf32>
    %5 = arith.addf %2, %4 : vector<256x64xf32>
    %cst_5 = arith.constant 0.000000e+00 : f32
    %6 = vector.broadcast %cst_5 : f32 to vector<256x64xf32>
    %7 = arith.subf %6, %5 : vector<256x64xf32>
    %8 = math.exp %7 : vector<256x64xf32>
    %cst_6 = arith.constant 1.000000e+00 : f32
    %9 = vector.broadcast %cst_6 : f32 to vector<256x64xf32>
    %10 = arith.addf %9, %8 : vector<256x64xf32>
    %11 = tpu.reciprocal %10 {approx = true} : vector<256x64xf32> -> vector<256x64xf32>
    %12 = arith.truncf %11 : vector<256x64xf32> to vector<256x64xbf16>
    %c0_7 = arith.constant 0 : index
    %c0_8 = arith.constant 0 : index
    %13 = vector.load %arg4[%c0_7, %c0_8] : memref<64x32xbf16, #tpu.memory_space<vmem>>, vector<64x32xbf16>
    %cst_9 = arith.constant dense<0.000000e+00> : vector<256x32xf32>
    %14 = tpu.matmul %12, %13, %cst_9 {dimension_numbers = #tpu.dot_dimension_numbers<[1], [0], [0], [1], [0, 0, 1, 1], [], []>} : vector<256x64xbf16>, vector<64x32xbf16>, vector<256x32xf32> -> vector<256x32xf32>
    %c0_10 = arith.constant 0 : index
    %c0_11 = arith.constant 0 : index
    %15 = vector.load %arg5[%c0_10, %c0_11] : memref<1x32xf32, #tpu.memory_space<vmem>>, vector<1x32xf32>
    %16 = vector.broadcast %15 : vector<1x32xf32> to vector<256x32xf32>
    %17 = arith.addf %14, %16 : vector<256x32xf32>
    %cst_12 = arith.constant 0.000000e+00 : f32
    %18 = vector.broadcast %cst_12 : f32 to vector<256x32xf32>
    %19 = arith.subf %18, %17 : vector<256x32xf32>
    %20 = math.exp %19 : vector<256x32xf32>
    %cst_13 = arith.constant 1.000000e+00 : f32
    %21 = vector.broadcast %cst_13 : f32 to vector<256x32xf32>
    %22 = arith.addf %21, %20 : vector<256x32xf32>
    %23 = tpu.reciprocal %22 {approx = true} : vector<256x32xf32> -> vector<256x32xf32>
    %24 = arith.truncf %23 : vector<256x32xf32> to vector<256x32xbf16>
    %c0_14 = arith.constant 0 : index
    %c0_15 = arith.constant 0 : index
    %25 = vector.load %arg6[%c0_14, %c0_15] : memref<32x16xbf16, #tpu.memory_space<vmem>>, vector<32x16xbf16>
    %cst_16 = arith.constant dense<0.000000e+00> : vector<256x16xf32>
    %26 = tpu.matmul %24, %25, %cst_16 {dimension_numbers = #tpu.dot_dimension_numbers<[1], [0], [0], [1], [0, 0, 1, 1], [], []>} : vector<256x32xbf16>, vector<32x16xbf16>, vector<256x16xf32> -> vector<256x16xf32>
    %c0_17 = arith.constant 0 : index
    %c0_18 = arith.constant 0 : index
    %27 = vector.load %arg7[%c0_17, %c0_18] : memref<1x16xf32, #tpu.memory_space<vmem>>, vector<1x16xf32>
    %28 = vector.broadcast %27 : vector<1x16xf32> to vector<256x16xf32>
    %29 = arith.addf %26, %28 : vector<256x16xf32>
    %30 = arith.truncf %29 : vector<256x16xf32> to vector<256x16xbf16>
    %c0_19 = arith.constant 0 : index
    %c0_20 = arith.constant 0 : index
    %31 = vector.load %arg8[%c0_19, %c0_20] : memref<16x32xbf16, #tpu.memory_space<vmem>>, vector<16x32xbf16>
    %cst_21 = arith.constant dense<0.000000e+00> : vector<256x32xf32>
    %32 = tpu.matmul %30, %31, %cst_21 {dimension_numbers = #tpu.dot_dimension_numbers<[1], [0], [0], [1], [0, 0, 1, 1], [], []>} : vector<256x16xbf16>, vector<16x32xbf16>, vector<256x32xf32> -> vector<256x32xf32>
    %c0_22 = arith.constant 0 : index
    %c0_23 = arith.constant 0 : index
    %33 = vector.load %arg9[%c0_22, %c0_23] : memref<1x32xf32, #tpu.memory_space<vmem>>, vector<1x32xf32>
    %34 = vector.broadcast %33 : vector<1x32xf32> to vector<256x32xf32>
    %35 = arith.addf %32, %34 : vector<256x32xf32>
    %cst_24 = arith.constant 0.000000e+00 : f32
    %36 = vector.broadcast %cst_24 : f32 to vector<256x32xf32>
    %37 = arith.subf %36, %35 : vector<256x32xf32>
    %38 = math.exp %37 : vector<256x32xf32>
    %cst_25 = arith.constant 1.000000e+00 : f32
    %39 = vector.broadcast %cst_25 : f32 to vector<256x32xf32>
    %40 = arith.addf %39, %38 : vector<256x32xf32>
    %41 = tpu.reciprocal %40 {approx = true} : vector<256x32xf32> -> vector<256x32xf32>
    %42 = arith.truncf %41 : vector<256x32xf32> to vector<256x32xbf16>
    %c0_26 = arith.constant 0 : index
    %c0_27 = arith.constant 0 : index
    %43 = vector.load %arg10[%c0_26, %c0_27] : memref<32x64xbf16, #tpu.memory_space<vmem>>, vector<32x64xbf16>
    %cst_28 = arith.constant dense<0.000000e+00> : vector<256x64xf32>
    %44 = tpu.matmul %42, %43, %cst_28 {dimension_numbers = #tpu.dot_dimension_numbers<[1], [0], [0], [1], [0, 0, 1, 1], [], []>} : vector<256x32xbf16>, vector<32x64xbf16>, vector<256x64xf32> -> vector<256x64xf32>
    %c0_29 = arith.constant 0 : index
    %c0_30 = arith.constant 0 : index
    %45 = vector.load %arg11[%c0_29, %c0_30] : memref<1x64xf32, #tpu.memory_space<vmem>>, vector<1x64xf32>
    %46 = vector.broadcast %45 : vector<1x64xf32> to vector<256x64xf32>
    %47 = arith.addf %44, %46 : vector<256x64xf32>
    %cst_31 = arith.constant 0.000000e+00 : f32
    %48 = vector.broadcast %cst_31 : f32 to vector<256x64xf32>
    %49 = arith.subf %48, %47 : vector<256x64xf32>
    %50 = math.exp %49 : vector<256x64xf32>
    %cst_32 = arith.constant 1.000000e+00 : f32
    %51 = vector.broadcast %cst_32 : f32 to vector<256x64xf32>
    %52 = arith.addf %51, %50 : vector<256x64xf32>
    %53 = tpu.reciprocal %52 {approx = true} : vector<256x64xf32> -> vector<256x64xf32>
    %54 = arith.truncf %53 : vector<256x64xf32> to vector<256x64xbf16>
    %c0_33 = arith.constant 0 : index
    %c0_34 = arith.constant 0 : index
    %55 = vector.load %arg12[%c0_33, %c0_34] : memref<64x128xbf16, #tpu.memory_space<vmem>>, vector<64x128xbf16>
    %cst_35 = arith.constant dense<0.000000e+00> : vector<256x128xf32>
    %56 = tpu.matmul %54, %55, %cst_35 {dimension_numbers = #tpu.dot_dimension_numbers<[1], [0], [0], [1], [0, 0, 1, 1], [], []>} : vector<256x64xbf16>, vector<64x128xbf16>, vector<256x128xf32> -> vector<256x128xf32>
    %c0_36 = arith.constant 0 : index
    %c0_37 = arith.constant 0 : index
    %57 = vector.load %arg13[%c0_36, %c0_37] : memref<1x128xf32, #tpu.memory_space<vmem>>, vector<1x128xf32>
    %58 = vector.broadcast %57 : vector<1x128xf32> to vector<256x128xf32>
    %59 = arith.addf %56, %58 : vector<256x128xf32>
    %c0_38 = arith.constant 0 : index
    %c0_39 = arith.constant 0 : index
    %60 = vector.load %arg14[%c0_38, %c0_39] : memref<256x128xf32, #tpu.memory_space<vmem>>, vector<256x128xf32>
    tpu.vector_store %arg14[%c0_38, %c0_39], %59 {strides = array<i32>} : memref<256x128xf32, #tpu.memory_space<vmem>>, vector<256x128xf32>,
    return
  }
  func.func @transform_0(%arg0: i32) -> (i32, i32) {
    %c0_i32 = arith.constant 0 : i32
    %c0_i32_0 = arith.constant 0 : i32
    return %arg0, %c0_i32 : i32, i32
  }
  func.func @transform_1(%arg0: i32) -> (i32, i32) {
    %c0_i32 = arith.constant 0 : i32
    %c0_i32_0 = arith.constant 0 : i32
    %c0_i32_1 = arith.constant 0 : i32
    return %c0_i32, %c0_i32_0 : i32, i32
  }
  func.func @transform_2(%arg0: i32) -> (i32, i32) {
    %c0_i32 = arith.constant 0 : i32
    %c0_i32_0 = arith.constant 0 : i32
    %c0_i32_1 = arith.constant 0 : i32
    return %c0_i32, %c0_i32_0 : i32, i32
  }
  func.func @transform_3(%arg0: i32) -> (i32, i32) {
    %c0_i32 = arith.constant 0 : i32
    %c0_i32_0 = arith.constant 0 : i32
    %c0_i32_1 = arith.constant 0 : i32
    return %c0_i32, %c0_i32_0 : i32, i32
  }
  func.func @transform_4(%arg0: i32) -> (i32, i32) {
    %c0_i32 = arith.constant 0 : i32
    %c0_i32_0 = arith.constant 0 : i32
    %c0_i32_1 = arith.constant 0 : i32
    return %c0_i32, %c0_i32_0 : i32, i32
  }
  func.func @transform_5(%arg0: i32) -> (i32, i32) {
    %c0_i32 = arith.constant 0 : i32
    %c0_i32_0 = arith.constant 0 : i32
    %c0_i32_1 = arith.constant 0 : i32
    return %c0_i32, %c0_i32_0 : i32, i32
  }
  func.func @transform_6(%arg0: i32) -> (i32, i32) {
    %c0_i32 = arith.constant 0 : i32
    %c0_i32_0 = arith.constant 0 : i32
    %c0_i32_1 = arith.constant 0 : i32
    return %c0_i32, %c0_i32_0 : i32, i32
  }
  func.func @transform_7(%arg0: i32) -> (i32, i32) {
    %c0_i32 = arith.constant 0 : i32
    %c0_i32_0 = arith.constant 0 : i32
    %c0_i32_1 = arith.constant 0 : i32
    return %c0_i32, %c0_i32_0 : i32, i32
  }
  func.func @transform_8(%arg0: i32) -> (i32, i32) {
    %c0_i32 = arith.constant 0 : i32
    %c0_i32_0 = arith.constant 0 : i32
    %c0_i32_1 = arith.constant 0 : i32
    return %c0_i32, %c0_i32_0 : i32, i32
  }
  func.func @transform_9(%arg0: i32) -> (i32, i32) {
    %c0_i32 = arith.constant 0 : i32
    %c0_i32_0 = arith.constant 0 : i32
    %c0_i32_1 = arith.constant 0 : i32
    return %c0_i32, %c0_i32_0 : i32, i32
  }
  func.func @transform_10(%arg0: i32) -> (i32, i32) {
    %c0_i32 = arith.constant 0 : i32
    %c0_i32_0 = arith.constant 0 : i32
    %c0_i32_1 = arith.constant 0 : i32
    return %c0_i32, %c0_i32_0 : i32, i32
  }
  func.func @transform_11(%arg0: i32) -> (i32, i32) {
    %c0_i32 = arith.constant 0 : i32
    %c0_i32_0 = arith.constant 0 : i32
    %c0_i32_1 = arith.constant 0 : i32
    return %c0_i32, %c0_i32_0 : i32, i32
  }
  func.func @transform_12(%arg0: i32) -> (i32, i32) {
    %c0_i32 = arith.constant 0 : i32
    %c0_i32_0 = arith.constant 0 : i32
    %c0_i32_1 = arith.constant 0 : i32
    return %c0_i32, %c0_i32_0 : i32, i32
  }
  func.func @transform_13(%arg0: i32) -> (i32, i32) {
    %c0_i32 = arith.constant 0 : i32
    %c0_i32_0 = arith.constant 0 : i32
    return %arg0, %c0_i32 : i32, i32
  }
}

</mosaic_0001>

<bundles_post_ra>
// kernel: tpu_custom_call.1
= control target key start
LH: loop header
LB: loop body
LE: loop exit
PB: predicated region body
PF: predicated region fallthrough
CT: control target
= control target key end

     0   :  { %s4692_s0 = inlined_call_operand.hbm [shape: bf16[512,128], index: 0, kind: input, shape index: {}]   ;;  %s4693_s1 = inlined_call_operand.vmem [shape: bf16[128,64], index: 1, kind: input, shape index: {}]   ;;  %s4694_s2 = inlined_call_operand.vmem [shape: f32[1,64], index: 2, kind: input, shape index: {}]   ;;  %s4695_s3 = inlined_call_operand.vmem [shape: bf16[64,32], index: 3, kind: input, shape index: {}]   ;;  %s4696_s4 = inlined_call_operand.vmem [shape: f32[1,32], index: 4, kind: input, shape index: {}]   ;;  %s4697_s5 = inlined_call_operand.vmem [shape: bf16[32,16], index: 5, kind: input, shape index: {}]   ;;  %s4698_s6 = inlined_call_operand.vmem [shape: f32[1,16], index: 6, kind: input, shape index: {}]   ;;  %s4699_s7 = inlined_call_operand.vmem [shape: bf16[16,32], index: 7, kind: input, shape index: {}]   ;;  %s4700_s8 = inlined_call_operand.vmem [shape: f32[1,32], index: 8, kind: input, shape index: {}]   ;;  %s4701_s9 = inlined_call_operand.vmem [shape: bf16[32,64], index: 9, kind: input, shape index: {}]   ;;  %s4702_s10 = inlined_call_operand.vmem [shape: f32[1,64], index: 10, kind: input, shape index: {}]   ;;  %s4703_s11 = inlined_call_operand.vmem [shape: bf16[64,128], index: 11, kind: input, shape index: {}]   ;;  %s4704_s12 = inlined_call_operand.vmem [shape: f32[1,128], index: 12, kind: input, shape index: {}]   ;;  %s4705_s13 = inlined_call_operand.hbm [shape: f32[512,128], index: 13, kind: output, shape index: {}]  }
   0x1   :  { %4714 = sst [smem:[#allocation13_spill]] %s4705_s13 }
   0x2   :  { %18 = vsyncpa [#allocation3], 0 }
   0x3   :  { %20 = vsyncpa [#allocation3 + $0x1], 0 }
   0x4   :  { %21 = vsyncpa [#allocation4], 0 }
   0x5   :  { %23 = vsyncpa [#allocation4 + $0x1], 0  ;;  %s4109_s25 = smov 0   ;;  %s4111_s26 = smov 0  }
   0x6   :  { %s4113_s27 = smov 0   ;;  %s4115_s28 = smov 0  }
   0x7 LB: > { %4715 = sst [smem:[#allocation8_spill]] %s4019_s25  ;;  %s4130_s29 = sadd.s32 4294967295, %s4031_s28   ;;  %s4031_s28 = sphi %s4115_s28, %s4732_s28   ;;  %s4027_s27 = sphi %s4113_s27, %s4734_s27   ;;  %s4023_s26 = sphi %s4111_s26, %s4736_s26   ;;  %s4019_s25 = sphi %s4109_s25, %s4735_s25  }
   0x8   : > { %4716 = sst [smem:[#allocation9_spill]] %s4027_s27  ;;  %s2848_s30 = sadd.s32 4294967294, %s4031_s28  }
   0x9   : > { %s4134_s14 = sadd.s32 1, %s4031_s28   ;;  %s36_s15 = sadd.s32 1, %s4027_s27 }
   0xa   : > { %4717 = sst [smem:[#allocation10_spill]] %s4134_s14  ;;  %s33_s16 = ssub.s32 %s4031_s28, %s4134_s14 }
   0xb   : > { %p43_p0 = scmp.ne.s32.totalorder %s4027_s27, %s4023_s26  ;;  %p34_p1 = scmp.eq.s32.totalorder %s33_s16, 0 }
   0xc   : > { %p44_p2 = scmp.eq.s32.totalorder %s4031_s28, 0  ;;  %p49_p3 = scmp.ne.s32.totalorder %s4023_s26, %s4019_s25 }
   0xd   : > { %p50_p4 = scmp.eq.s32.totalorder %s4130_s29, 0  ;;  %p325_p7 = scmp.eq.s32.totalorder %s4130_s29, 1 }
   0xe   : > { %s4146_s17 = scalar_select %p34_p1, %s4027_s27, %s36_s15  }
   0xf   : > { %p4148_p5 = por %p44_p2, %p43_p0  ;;  %p4152_p6 = por %p50_p4, %p49_p3 }
  0x10   : > { %4718 = sst [smem:[#allocation11_spill]] %s4146_s17  ;;  %p331_p8 = scmp.eq.s32.totalorder %s2848_s30, 1 }
  0x11   : > { %s4720_s19 = scalar_select %p4152_p6, 1, 0 }
  0x12   : > { %p3352_p10 = scmp.lt.s32.totalorder %s4031_s28, 2  ;;  %p4159_p11 = por %p325_p7, %p43_p0 }
  0x13   : > { %p4163_p12 = por %p331_p8, %p49_p3  ;;  %s387_s22 = sand.u32 1, %s4027_s27  }
  0x14   : > { %s4721_s20 = scalar_select %p4159_p11, 1, 0 }
  0x15   : > { %s4722_s21 = scalar_select %p4163_p12, 1, 0 }
  0x16   : > { %s2985_s23 = sshll.u32 %s4031_s28, 11  ;;  %s2851_s24 = sshll.u32 %s387_s22, 7 }
  0x17   : > { %4723 = sst [smem:[#allocation12_spill]] %s4722_s21  ;;  %s4172_s17 = scalar_lea.hbm %s4692_s0, %s2985_s23 }
  0x18   : > { %s391_s30 = scalar_lea.vmem [#allocation2], %s2851_s24  ;;  %p4176_p13 = pnand %p3352_p10, %p4148_p5 }
  0x19   : > { %s398_s14 = sshll.u32 %s391_s30, 4  ;;  %s4182_s27 = scalar_lea.sflag [#allocation3], %s387_s22  ;;  %s4180_s14 = int_to_ptr.vmem [resolvable:$true] %s398_s14 }
  0x1a   : > { %s3939_s21 = scalar_lea.hbm %s4172_s17, 2048  ;;  %p3941_p1 = pneg %p4176_p13 }
  0x1b   : > { %p3940_p0 = scmp.ne.s32.totalorder %s4172_s17, %s3939_s21  ;;  %s3944_s24 = scalar_lea.hbm %s4692_s0, 4096 }
  0x1c   : > { %p3945_p4 = scmp.lt.s32.totalorder %s4172_s17, %s4692_s0  ;;  %p3946_p5 = scmp.lt.s32.totalorder %s3944_s24, %s3939_s21 }
  0x1d   : > { %p3942_p2 = pnand %p3941_p1, %p3940_p0 }
  0x1e   : > { %p3947_p7 = por %p3946_p5, %p3945_p4 }
  0x1f   : > { %p3943_p3 = pneg %p3942_p2 }
  0x21   : > { %p3948_p8 = pnand %p3947_p7, %p3943_p3 }
  0x23   : > { %3951 = shalt.err (!%p3948_p8)
}
  0x24   : > { %s3952_s22 = scalar_lea.vmem %s4180_s14, 2048  ;;  %s4033_s30 = smov [#allocation2]  }
  0x25   : > { %p3953_p10 = scmp.ne.s32.totalorder %s4180_s14, %s3952_s22  ;;  %s3957_s13 = sshll.u32 %s4033_s30, 4  ;;  %s3958_s13 = int_to_ptr.vmem [resolvable:$false] %s3957_s13 }
  0x26   : > { %s3959_s23 = scalar_lea.vmem %s3958_s13, 4096  ;;  %p3960_p2 = scmp.lt.s32.totalorder %s4180_s14, %s3958_s13 }
  0x27   : > { %p3955_p9 = pnand %p3953_p10, %p3941_p1  ;;  %p3961_p12 = scmp.lt.s32.totalorder %s3959_s23, %s3952_s22 }
  0x29   : > { %p3956_p0 = pneg %p3955_p9  ;;  %p3962_p11 = por %p3961_p12, %p3960_p2 }
  0x2b   : > { %p3963_p6 = pnand %p3962_p11, %p3956_p0 }
  0x2d   : > { %3966 = shalt.err (!%p3963_p6)
}
  0x2e   : > { %s4034_s21 = smov 64   ;;  %s4035_s15 = smov 4  }
  0x2f   : > { %3347 = dma.hbm_to_vmem [thread:$0]  (!%p4176_p13), %s4172_s17, 2048, %s4180_s14, %s4182_s27, %s4034_s21, %s4034_s21, %s4035_s15  }
  0x30   : > { %p2854_p9 = scmp.ge.s32.totalorder %s4031_s28, 1  ;;  %p406_p1 = scmp.lt.s32.totalorder %s4031_s28, 3 }
  0x32   : > { %p407_p3 = pnand %p2854_p9, %p406_p1 }
  0x33   : > { %s4206_s13 = sand.u32 (!%p407_p3), 1, %s4023_s26   ;;  %p4725_p6 = scmp.ne.s32.totalorder (!%p407_p3), %s4720_s19, 0 }
  0x34   : > { %410 = sbr.rel (%p407_p3) target bundleno = 1525 (0x5f5), region = 72  ;;  %s2855_s24 = sshll.u32 (!%p407_p3), %s4206_s13, 7 }
  0x35   : > { %s413_s18 = scalar_lea.sflag (!%p407_p3), [#allocation3], %s4206_s13  ;;  %s4210_s16 = scalar_lea.vmem (!%p407_p3), [#allocation2], %s2855_s24 }
  0x39   : > { %4010 = dma.done.wait (%p4725_p6), %s413_s18, 2048  }
  0x3a   : > { %4012 = vsyncadd (%p4725_p6), %s413_s18, 4294965248  ;;  %v3390_v0 = vld [vmem:[%s4693_s1 + $0x38] sm:$0xff]   ;;  %v3391_v1 = vld [vmem:[%s4693_s1 + $0x30] sm:$0xff]   ;;  %vm1037_vm0 = vcmask 523264   ;;  %vm1446_vm1 = vcmask 261120   ;;  %vm1687_vm2 = vcmask 130048  }
  0x3b   : > { %3104 = vmatprep.subr.bf16.mxu0 %v3390_v0  ;;  %v3392_v2 = vld [vmem:[%s4693_s1 + $0x28] sm:$0xff]   ;;  %v3393_v3 = vld [vmem:[%s4693_s1 + $0x20] sm:$0xff]   ;;  %v3394_v5 = vld [vmem:[%s4693_s1 + $0x18] sm:$0xff]   ;;  %s2856_s27 = sshll.u32 %s4206_s13, 8  ;;  %s2986_s30 = sshll.u32 %s4130_s29, 12 }
  0x3c   : > { %3105 = vmatpush3.bf16.msra.mxu0 %v3390_v0  ;;  %v3398_v4 = vld [vmem:[%s4210_s16] sm:$0xff]   ;;  %v3395_v6 = vld [vmem:[%s4693_s1 + $0x10] sm:$0xff]   ;;  %v3396_v7 = vld [vmem:[%s4693_s1 + $0x8] sm:$0xff]   ;;  %s4577_s22 = scalar_lea.vmem [#allocation5], %s2856_s27  ;;  %s4726_s15 = sld [smem:[#allocation13_spill]] }
  0x3d   : > { %3106 = vmatprep.subr.bf16.mxu0 %v3391_v1  ;;  %3120 = vmatprep.mubr.bf16.mxu0 %v3398_v4  ;;  %v3397_v8 = vld [vmem:[%s4693_s1] sm:$0xff]   ;;  %v3399_v9 = vld [vmem:[%s4210_s16 + $0x8] sm:$0xff]   ;;  %v3400_v10 = vld [vmem:[%s4210_s16 + $0x10] sm:$0xff]   ;;  %s2775_s23 = sshll.u32 %s4577_s22, 4  ;;  %s2762_s29 = scalar_lea.sflag [#allocation4], %s4206_s13  ;;  %s4646_s23 = int_to_ptr.vmem [resolvable:$true] %s2775_s23 }
  0x3e   : > { %v3401_v11 = vld [vmem:[%s4210_s16 + $0x18] sm:$0xff]   ;;  %v3402_v12 = vld [vmem:[%s4210_s16 + $0x20] sm:$0xff]   ;;  %v3403_v13 = vld [vmem:[%s4210_s16 + $0x28] sm:$0xff]   ;;  %s3967_s24 = scalar_lea.vmem %s4646_s23, 4096  ;;  %p4727_p12 = scmp.ne.s32.totalorder %s4721_s20, 0 }
  0x3f   : > { %v3404_v14 = vld [vmem:[%s4210_s16 + $0x30] sm:$0xff]   ;;  %v3405_v15 = vld [vmem:[%s4210_s16 + $0x38] sm:$0xff]   ;;  %v3406_v16 = vld [vmem:[%s4210_s16 + $0x40] sm:$0xff]   ;;  %p3968_p11 = scmp.ne.s32.totalorder %s4646_s23, %s3967_s24  ;;  %s4036_s18 = smov [#allocation5]  }
  0x40   : > { %3107 = vmatpush3.bf16.msra.mxu0 %v3391_v1  ;;  %v3407_v17 = vld [vmem:[%s4210_s16 + $0x48] sm:$0xff]   ;;  %v3408_v18 = vld [vmem:[%s4210_s16 + $0x50] sm:$0xff]   ;;  %v3409_v19 = vld [vmem:[%s4210_s16 + $0x58] sm:$0xff]   ;;  %s3971_s25 = sshll.u32 %s4036_s18, 4  ;;  %s3972_s25 = int_to_ptr.vmem [resolvable:$false] %s3971_s25 }
  0x41   : > { %3108 = vmatprep.subr.bf16.mxu0 %v3392_v2  ;;  %v3410_v20 = vld [vmem:[%s4210_s16 + $0x60] sm:$0xff]   ;;  %v3411_v21 = vld [vmem:[%s4210_s16 + $0x68] sm:$0xff]   ;;  %v3412_v22 = vld [vmem:[%s4210_s16 + $0x70] sm:$0xff]   ;;  %p3969_p13 = pnand %p3968_p11, %p4727_p12  ;;  %s3973_s27 = scalar_lea.vmem %s3972_s25, 8192 }
  0x42   : > { %v3413_v23 = vld [vmem:[%s4210_s16 + $0x78] sm:$0xff]   ;;  %v3415_v25 = vld [vmem:[%s4695_s3 + $0x10] sm:$0xff]   ;;  %v3416_v26 = vld [vmem:[%s4695_s3 + $0x8] sm:$0xff]   ;;  %s4644_s16 = scalar_lea.hbm %s4726_s15, %s2986_s30  ;;  %p3974_p5 = scmp.lt.s32.totalorder %s4646_s23, %s3972_s25 }
  0x43   : > { %v3414_v24 = vld [vmem:[%s4695_s3 + $0x18] sm:$0xff]   ;;  %v3417_v27 = vld [vmem:[%s4695_s3] sm:$0xff]   ;;  %v4271_v28 = vld [vmem:[%s4697_s5 + $0x8] sm:$0xff]   ;;  %p3970_p4 = pneg %p3969_p13  ;;  %p3975_p7 = scmp.lt.s32.totalorder %s3973_s27, %s3967_s24 }
  0x44   : > { %3109 = vmatpush3.bf16.msra.mxu0 %v3392_v2  ;;  %3152 = vmatprep.subr.bf16.mxu1 %v3414_v24  ;;  %v4277_v29 = vld [vmem:[%s4694_s2] ss:$0 sm:$0xff] }
  0x45   : > { %3110 = vmatprep.subr.bf16.mxu0 %v3393_v3  ;;  %3153 = vmatpush3.bf16.msra.mxu1 %v3414_v24  ;;  %p3976_p8 = por %p3975_p7, %p3974_p5 }
  0x46   : > { %3154 = vmatprep.subr.bf16.mxu1 %v3415_v25 }
  0x47   : > { %p3977_p10 = pnand %p3976_p8, %p3970_p4 }
  0x48   : > { %3111 = vmatpush3.bf16.msra.mxu0 %v3393_v3 }
  0x49   : > { %3112 = vmatprep.subr.bf16.mxu0 %v3394_v5  ;;  %3155 = vmatpush3.bf16.msra.mxu1 %v3415_v25 }
  0x4a   : > { %3156 = vmatprep.subr.bf16.mxu1 %v3416_v26 }
  0x4c   : > { %3113 = vmatpush3.bf16.msra.mxu0 %v3394_v5 }
  0x4d   : > { %3114 = vmatprep.subr.bf16.mxu0 %v3395_v6  ;;  %3157 = vmatpush3.bf16.msra.mxu1 %v3416_v26 }
  0x4e   : > { %3158 = vmatprep.subr.bf16.mxu1 %v3417_v27 }
  0x50   : > { %3115 = vmatpush3.bf16.msra.mxu0 %v3395_v6 }
  0x51   : > { %3116 = vmatprep.subr.bf16.mxu0 %v3396_v7  ;;  %3159 = vmatpush3.bf16.msra.mxu1 %v3417_v27 }
  0x52   : > { %3192 = vmatprep.subr.bf16.mxu1 %v4271_v28 }
  0x54   : > { %3117 = vmatpush3.bf16.msra.mxu0 %v3396_v7 }
  0x55   : > { %3118 = vmatprep.subr.bf16.mxu0 %v3397_v8 }
  0x58   : > { %3119 = vmatpush3.bf16.msra.mxu0 %v3397_v8 }
  0x5b   : > { %3121 = vmatmul.mubr.bf16.vlgmr.msra.gmra.mxu0 %v3399_v9 }
  0x5c   : > { %3124 = vmatprep.mubr.bf16.mxu0 %v3400_v10 }
  0x63   : > { %3125 = vmatmul.mubr.bf16.gmra.mxu0 %v3401_v11 }
  0x64   : > { %3128 = vmatprep.mubr.bf16.mxu0 %v3402_v12 }
  0x6b   : > { %3129 = vmatmul.mubr.bf16.gmra.mxu0 %v3403_v13 }
  0x6c   : > { %3132 = vmatprep.mubr.bf16.mxu0 %v3404_v14 }
  0x73   : > { %3133 = vmatmul.mubr.bf16.gmra.mxu0 %v3405_v15 }
  0x74   : > { %3136 = vmatprep.mubr.bf16.mxu0 %v3406_v16 }
  0x7b   : > { %3137 = vmatmul.mubr.bf16.gmra.mxu0 %v3407_v17 }
  0x7c   : > { %3140 = vmatprep.mubr.bf16.mxu0 %v3408_v18 }
  0x83   : > { %3141 = vmatmul.mubr.bf16.gmra.mxu0 %v3409_v19 }
  0x84   : > { %3144 = vmatprep.mubr.bf16.mxu0 %v3410_v20 }
  0x8b   : > { %3145 = vmatmul.mubr.bf16.gmra.mxu0 %v3411_v21 }
  0x8c   : > { %3148 = vmatprep.mubr.bf16.mxu0 %v3412_v22 }
  0x93   : > { %3149 = vmatmul.mubr.bf16.gmra.mxu0 %v3413_v23 }
 0x11b   : > { %v3122_v30 = vpop.f32.mrf.mxu0 }
 0x11c   : > { %v704_v31 = vadd.f32 %v3122_v30, %v4277_v29 }
 0x11d   : > { %v695_v32 = vpop.f32.mrf.mxu0 }
 0x11e   : > { %v824_v33 = vsub.f32 0.0, %v704_v31  ;;  %v696_v34 = vadd.f32 %v4277_v29, %v695_v32 }
 0x11f   : > { %v3123_v35 = vpop.f32.mrf.mxu0 }
 0x120   : > { %v858_v36 = vmul.f32 1.442695, %v824_v33  ;;  %v822_v37 = vsub.f32 0.0, %v696_v34  ;;  %v707_v38 = vadd.f32 %v3123_v35, %v4277_v29 }
 0x121   : > { %v698_v39 = vpop.f32.mrf.mxu0 }
 0x122   : > { %3427 = vpow2.f32 %v858_v36  ;;  %v854_v40 = vmul.f32 1.442695, %v822_v37  ;;  %v825_v41 = vsub.f32 0.0, %v707_v38  ;;  %v699_v42 = vadd.f32 %v4277_v29, %v698_v39 }
 0x123   : > { %v3126_v43 = vpop.f32.mrf.mxu0 }
 0x124   : > { %3429 = vpow2.f32 %v854_v40  ;;  %v860_v44 = vmul.f32 1.442695, %v825_v41  ;;  %v823_v45 = vsub.f32 0.0, %v699_v42  ;;  %v720_v46 = vadd.f32 %v3126_v43, %v4277_v29 }
 0x125   : > { %v711_v47 = vpop.f32.mrf.mxu0 }
 0x126   : > { %3431 = vpow2.f32 %v860_v44  ;;  %v856_v48 = vmul.f32 1.442695, %v823_v45  ;;  %v828_v49 = vsub.f32 0.0, %v720_v46  ;;  %v712_v50 = vadd.f32 %v4277_v29, %v711_v47 }
 0x127   : > { %v3127_v51 = vpop.f32.mrf.mxu0 }
 0x128   : > { %3433 = vpow2.f32 %v856_v48  ;;  %v866_v52 = vmul.f32 1.442695, %v828_v49  ;;  %v826_v53 = vsub.f32 0.0, %v712_v50  ;;  %v723_v54 = vadd.f32 %v3127_v51, %v4277_v29 }
 0x129   : > { %v714_v55 = vpop.f32.mrf.mxu0 }
 0x12a   : > { %3435 = vpow2.f32 %v866_v52  ;;  %v862_v56 = vmul.f32 1.442695, %v826_v53  ;;  %v829_v57 = vsub.f32 0.0, %v723_v54  ;;  %v715_v58 = vadd.f32 %v4277_v29, %v714_v55 }
 0x12b   : > { %v3130_v59 = vpop.f32.mrf.mxu0 }
 0x12c   : > { %3437 = vpow2.f32 %v862_v56  ;;  %v868_v60 = vmul.f32 1.442695, %v829_v57  ;;  %v827_v61 = vsub.f32 0.0, %v715_v58  ;;  %v736_v62 = vadd.f32 %v3130_v59, %v4277_v29 }
 0x12d   : > { %v727_v63 = vpop.f32.mrf.mxu0 }
 0x12e   : > { %3439 = vpow2.f32 %v868_v60  ;;  %v864_v0 = vmul.f32 1.442695, %v827_v61  ;;  %v832_v1 = vsub.f32 0.0, %v736_v62  ;;  %v728_v2 = vadd.f32 %v4277_v29, %v727_v63 }
 0x12f   : > { %v3428_v3 = vpop.eup %3427  ;;  %v3131_v4 = vpop.f32.mrf.mxu0 }
 0x130   : > { %v920_v5 = vadd.f32 1.0, %v3428_v3  ;;  %3441 = vpow2.f32 %v864_v0  ;;  %v874_v6 = vmul.f32 1.442695, %v832_v1  ;;  %v830_v7 = vsub.f32 0.0, %v728_v2 }
 0x131   : > { %v3430_v8 = vpop.eup %3429  ;;  %v739_v9 = vadd.f32 %v3131_v4, %v4277_v29  ;;  %v730_v10 = vpop.f32.mrf.mxu0 }
 0x132   : > { %3443 = vrcp.f32 %v920_v5  ;;  %v918_v11 = vadd.f32 1.0, %v3430_v8  ;;  %v870_v12 = vmul.f32 1.442695, %v830_v7  ;;  %v731_v13 = vadd.f32 %v4277_v29, %v730_v10 }
 0x133   : > { %v3432_v14 = vpop.eup %3431  ;;  %3445 = vpow2.f32 %v874_v6  ;;  %v833_v15 = vsub.f32 0.0, %v739_v9  ;;  %v3134_v16 = vpop.f32.mrf.mxu0 }
 0x134   : > { %3447 = vrcp.f32 %v918_v11  ;;  %v921_v17 = vadd.f32 1.0, %v3432_v14  ;;  %v831_v18 = vsub.f32 0.0, %v731_v13  ;;  %v752_v19 = vadd.f32 %v3134_v16, %v4277_v29 }
 0x135   : > { %v3434_v20 = vpop.eup %3433  ;;  %3449 = vpow2.f32 %v870_v12  ;;  %v876_v21 = vmul.f32 1.442695, %v833_v15  ;;  %v743_v22 = vpop.f32.mrf.mxu0 }
 0x136   : > { %3451 = vrcp.f32 %v921_v17  ;;  %v919_v23 = vadd.f32 1.0, %v3434_v20  ;;  %v872_v24 = vmul.f32 1.442695, %v831_v18  ;;  %v836_v25 = vsub.f32 0.0, %v752_v19 }
 0x137   : > { %v3436_v26 = vpop.eup %3435  ;;  %3453 = vpow2.f32 %v876_v21  ;;  %v744_v27 = vadd.f32 %v4277_v29, %v743_v22  ;;  %v3135_v30 = vpop.f32.mrf.mxu0 }
 0x138   : > { %3455 = vrcp.f32 %v919_v23  ;;  %v924_v31 = vadd.f32 1.0, %v3436_v26  ;;  %v882_v32 = vmul.f32 1.442695, %v836_v25  ;;  %v755_v33 = vadd.f32 %v3135_v30, %v4277_v29 }
 0x139   : > { %v3438_v34 = vpop.eup %3437  ;;  %3457 = vpow2.f32 %v872_v24  ;;  %v834_v35 = vsub.f32 0.0, %v744_v27  ;;  %v746_v36 = vpop.f32.mrf.mxu0 }
 0x13a   : > { %3459 = vrcp.f32 %v924_v31  ;;  %v922_v37 = vadd.f32 1.0, %v3438_v34  ;;  %v837_v38 = vsub.f32 0.0, %v755_v33  ;;  %v747_v39 = vadd.f32 %v4277_v29, %v746_v36 }
 0x13b   : > { %v3440_v40 = vpop.eup %3439  ;;  %3461 = vpow2.f32 %v882_v32  ;;  %v878_v41 = vmul.f32 1.442695, %v834_v35  ;;  %v3138_v42 = vpop.f32.mrf.mxu0 }
 0x13c   : > { %3463 = vrcp.f32 %v922_v37  ;;  %v925_v43 = vadd.f32 1.0, %v3440_v40  ;;  %v884_v44 = vmul.f32 1.442695, %v837_v38  ;;  %v835_v45 = vsub.f32 0.0, %v747_v39 }
 0x13d   : > { %v3442_v46 = vpop.eup %3441  ;;  %3465 = vpow2.f32 %v878_v41  ;;  %v768_v47 = vadd.f32 %v3138_v42, %v4277_v29  ;;  %v759_v48 = vpop.f32.mrf.mxu0 }
 0x13e   : > { %3467 = vrcp.f32 %v925_v43  ;;  %v923_v49 = vadd.f32 1.0, %v3442_v46  ;;  %v880_v50 = vmul.f32 1.442695, %v835_v45  ;;  %v760_v51 = vadd.f32 %v4277_v29, %v759_v48 }
 0x13f   : > { %v3444_v52 = vpop.eup %3443  ;;  %3469 = vpow2.f32 %v884_v44  ;;  %v840_v53 = vsub.f32 0.0, %v768_v47  ;;  %v3139_v54 = vpop.f32.mrf.mxu0 }
 0x140   : > { %v3446_v55 = vpop.eup %3445  ;;  %3471 = vrcp.f32 %v923_v49  ;;  %v838_v56 = vsub.f32 0.0, %v760_v51  ;;  %v771_v57 = vadd.f32 %v3139_v54, %v4277_v29 }
 0x141   : > { %v3448_v58 = vpop.eup %3447  ;;  %v928_v59 = vadd.f32 1.0, %v3446_v55  ;;  %3473 = vpow2.f32 %v880_v50  ;;  %v890_v60 = vmul.f32 1.442695, %v840_v53  ;;  %v762_v61 = vpop.f32.mrf.mxu0 }
 0x142   : > { %v3450_v62 = vpop.eup %3449  ;;  %v886_v63 = vmul.f32 1.442695, %v838_v56  ;;  %v841_v0 = vsub.f32 0.0, %v771_v57  ;;  %v763_v1 = vadd.f32 %v4277_v29, %v762_v61 }
 0x143   : > { %v3452_v2 = vpop.eup %3451  ;;  %3475 = vrcp.f32 %v928_v59  ;;  %v926_v3 = vadd.f32 1.0, %v3450_v62  ;;  %v3142_v4 = vpop.f32.mrf.mxu0 }
 0x144   : > { %v3454_v5 = vpop.eup %3453  ;;  %3477 = vpow2.f32 %v890_v60  ;;  %v892_v6 = vmul.f32 1.442695, %v841_v0  ;;  %v839_v7 = vsub.f32 0.0, %v763_v1  ;;  %v784_v8 = vadd.f32 %v3142_v4, %v4277_v29 }
 0x145   : > { %v3456_v9 = vpop.eup %3455  ;;  %3479 = vrcp.f32 %v926_v3  ;;  %v929_v10 = vadd.f32 1.0, %v3454_v5  ;;  %v775_v11 = vpop.f32.mrf.mxu0  ;;  %v983_v20 = vpack.c.bf16 %v3452_v2, %v3444_v52 }
 0x146   : > { %v3458_v12 = vpop.eup %3457  ;;  %3481 = vpow2.f32 %v886_v63  ;;  %v888_v13 = vmul.f32 1.442695, %v839_v7  ;;  %v844_v14 = vsub.f32 0.0, %v784_v8  ;;  %v776_v15 = vadd.f32 %v4277_v29, %v775_v11 }
 0x147   : > { %v3460_v16 = vpop.eup %3459  ;;  %3483 = vrcp.f32 %v929_v10  ;;  %v927_v17 = vadd.f32 1.0, %v3458_v12  ;;  %v3143_v18 = vpop.f32.mrf.mxu0  ;;  %v982_v19 = vpack.c.bf16 %v3456_v9, %v3448_v58 }
 0x148   : > { %v3462_v21 = vpop.eup %3461  ;;  %3485 = vpow2.f32 %v892_v6  ;;  %v898_v22 = vmul.f32 1.442695, %v844_v14  ;;  %v842_v23 = vsub.f32 0.0, %v776_v15  ;;  %v787_v24 = vadd.f32 %v3143_v18, %v4277_v29 }
 0x149   : > { %v3464_v25 = vpop.eup %3463  ;;  %3487 = vrcp.f32 %v927_v17  ;;  %v932_v26 = vadd.f32 1.0, %v3462_v21  ;;  %3160 = vmatprep.mubr.msk.bf16.mxu1 %vm1037_vm0, %v982_v19  ;;  %v778_v27 = vpop.f32.mrf.mxu0 }
 0x14a   : > { %v3466_v30 = vpop.eup %3465  ;;  %3489 = vpow2.f32 %v888_v13  ;;  %v894_v31 = vmul.f32 1.442695, %v842_v23  ;;  %v845_v32 = vsub.f32 0.0, %v787_v24  ;;  %v779_v33 = vadd.f32 %v4277_v29, %v778_v27  ;;  %3161 = vmatmul.mubr.msk.bf16.vlgmr.msra.gmra.mxu1 %vm1037_vm0, %v983_v20 }
 0x14b   : > { %v3468_v34 = vpop.eup %3467  ;;  %3491 = vrcp.f32 %v932_v26  ;;  %v930_v35 = vadd.f32 1.0, %v3466_v30  ;;  %v3146_v36 = vpop.f32.mrf.mxu0  ;;  %3193 = vmatpush3.bf16.msra.mxu1 %v4271_v28 }
 0x14c   : > { %v3470_v37 = vpop.eup %3469  ;;  %3493 = vpow2.f32 %v898_v22  ;;  %v900_v38 = vmul.f32 1.442695, %v845_v32  ;;  %v843_v39 = vsub.f32 0.0, %v779_v33  ;;  %v800_v40 = vadd.f32 %v3146_v36, %v4277_v29 }
 0x14d   : > { %v3472_v41 = vpop.eup %3471  ;;  %3495 = vrcp.f32 %v930_v35  ;;  %v933_v42 = vadd.f32 1.0, %v3470_v37  ;;  %v791_v43 = vpop.f32.mrf.mxu0  ;;  %v985_v50 = vpack.c.bf16 %v3468_v34, %v3460_v16 }
 0x14e   : > { %v3474_v44 = vpop.eup %3473  ;;  %3497 = vpow2.f32 %v894_v31  ;;  %v896_v45 = vmul.f32 1.442695, %v843_v39  ;;  %v848_v46 = vsub.f32 0.0, %v800_v40  ;;  %v792_v47 = vadd.f32 %v4277_v29, %v791_v43 }
 0x14f   : > { %3499 = vrcp.f32 %v933_v42  ;;  %v931_v48 = vadd.f32 1.0, %v3474_v44  ;;  %v3147_v49 = vpop.f32.mrf.mxu0  ;;  %v984_v28 = vpack.c.bf16 %v3472_v41, %v3464_v25 }
 0x150   : > { %v3476_v51 = vpop.eup %3475  ;;  %3501 = vpow2.f32 %v900_v38  ;;  %v906_v52 = vmul.f32 1.442695, %v848_v46  ;;  %v846_v53 = vsub.f32 0.0, %v792_v47  ;;  %v803_v54 = vadd.f32 %v3147_v49, %v4277_v29 }
 0x151   : > { %v3478_v55 = vpop.eup %3477  ;;  %3503 = vrcp.f32 %v931_v48  ;;  %3164 = vmatprep.mubr.msk.bf16.mxu1 %vm1037_vm0, %v984_v28  ;;  %v794_v56 = vpop.f32.mrf.mxu0 }
 0x152   : > { %v3480_v57 = vpop.eup %3479  ;;  %3505 = vpow2.f32 %v896_v45  ;;  %v902_v58 = vmul.f32 1.442695, %v846_v53  ;;  %v849_v59 = vsub.f32 0.0, %v803_v54  ;;  %3165 = vmatmul.mubr.msk.bf16.gmra.mxu1 %vm1037_vm0, %v985_v50  ;;  %v795_v61 = vadd.f32 %v4277_v29, %v794_v56 }
 0x153   : > { %v3482_v60 = vpop.eup %3481  ;;  %v3150_v62 = vpop.f32.mrf.mxu0  ;;  %3507 = vpow2.f32 %v906_v52  ;;  %v936_v4 = vadd.f32 1.0, %v3478_v55 }
 0x154   : > { %v3484_v63 = vpop.eup %3483  ;;  %v934_v0 = vadd.f32 1.0, %v3482_v60  ;;  %v908_v1 = vmul.f32 1.442695, %v849_v59  ;;  %v816_v2 = vadd.f32 %v3150_v62, %v4277_v29  ;;  %3509 = vpow2.f32 %v902_v58 }
 0x155   : > { %v3486_v3 = vpop.eup %3485  ;;  %v847_v5 = vsub.f32 0.0, %v795_v61  ;;  %v807_v6 = vpop.f32.mrf.mxu0  ;;  %v987_v15 = vpack.c.bf16 %v3484_v63, %v3476_v51 }
 0x156   : > { %v3488_v7 = vpop.eup %3487  ;;  %3511 = vrcp.f32 %v934_v0  ;;  %v937_v8 = vadd.f32 1.0, %v3486_v3  ;;  %v852_v9 = vsub.f32 0.0, %v816_v2  ;;  %v808_v10 = vadd.f32 %v4277_v29, %v807_v6 }
 0x157   : > { %v3490_v11 = vpop.eup %3489  ;;  %3513 = vpow2.f32 %v908_v1  ;;  %v904_v12 = vmul.f32 1.442695, %v847_v5  ;;  %v3151_v13 = vpop.f32.mrf.mxu0  ;;  %v986_v14 = vpack.c.bf16 %v3488_v7, %v3480_v57 }
 0x158   : > { %v3492_v16 = vpop.eup %3491  ;;  %3515 = vrcp.f32 %v937_v8  ;;  %v935_v17 = vadd.f32 1.0, %v3490_v11  ;;  %v914_v18 = vmul.f32 1.442695, %v852_v9  ;;  %v850_v19 = vsub.f32 0.0, %v808_v10 }
 0x159   : > { %v3494_v20 = vpop.eup %3493  ;;  %3517 = vpow2.f32 %v904_v12  ;;  %v819_v21 = vadd.f32 %v3151_v13, %v4277_v29  ;;  %3168 = vmatprep.mubr.msk.bf16.mxu1 %vm1037_vm0, %v986_v14  ;;  %v810_v22 = vpop.f32.mrf.mxu0 }
 0x15a   : > { %v3496_v23 = vpop.eup %3495  ;;  %3519 = vrcp.f32 %v935_v17  ;;  %v910_v24 = vmul.f32 1.442695, %v850_v19  ;;  %v811_v25 = vadd.f32 %v4277_v29, %v810_v22  ;;  %3169 = vmatmul.mubr.msk.bf16.gmra.mxu1 %vm1037_vm0, %v987_v15  ;;  %v940_v39 = vadd.f32 1.0, %v3494_v20  ;;  %v3419_v17 = vld [vmem:[%s4697_s5] sm:$0xff]  }
 0x15b   : > { %v3498_v26 = vpop.eup %3497  ;;  %3521 = vrcp.f32 %v936_v4  ;;  %v853_v27 = vsub.f32 0.0, %v819_v21  ;;  %3194 = vmatprep.subr.bf16.mxu1 %v3419_v17  ;;  %v4342_v19 = vld [vmem:[%s4696_s4] ss:$0 sm:$0xff] }
 0x15c   : > { %v3500_v30 = vpop.eup %3499  ;;  %v938_v31 = vadd.f32 1.0, %v3498_v26  ;;  %3523 = vpow2.f32 %v914_v18  ;;  %v851_v32 = vsub.f32 0.0, %v811_v25  ;;  %3195 = vmatpush3.bf16.msra.mxu1 %v3419_v17  ;;  %v4334_v18 = vld [vmem:[%s4699_s7] sm:$0xff]  }
 0x15d   : > { %v3502_v33 = vpop.eup %3501  ;;  %3525 = vpow2.f32 %v910_v24  ;;  %v916_v34 = vmul.f32 1.442695, %v853_v27  ;;  %v989_v41 = vpack.c.bf16 %v3500_v30, %v3492_v16  ;;  %3228 = vmatprep.subr.bf16.mxu0 %v4334_v18  ;;  %3338 = vmatprep.subr.bf16.mxu1 %v4334_v18 }
 0x15e   : > { %v3504_v35 = vpop.eup %3503  ;;  %3527 = vrcp.f32 %v938_v31  ;;  %v941_v36 = vadd.f32 1.0, %v3502_v33  ;;  %v912_v37 = vmul.f32 1.442695, %v851_v32  ;;  %3229 = vmatpush3.bf16.msra.mxu0 %v4334_v18 }
 0x15f   : > { %v3506_v38 = vpop.eup %3505  ;;  %3529 = vpow2.f32 %v916_v34  ;;  %v988_v29 = vpack.c.bf16 %v3504_v35, %v3496_v23 }
 0x160   : > { %3531 = vrcp.f32 %v941_v36  ;;  %v939_v40 = vadd.f32 1.0, %v3506_v38  ;;  %v3508_v42 = vpop.eup %3507 }
 0x161   : > { %3533 = vpow2.f32 %v912_v37  ;;  %3172 = vmatprep.mubr.msk.bf16.mxu1 %vm1037_vm0, %v988_v29  ;;  %v3510_v43 = vpop.eup %3509  ;;  %v944_v50 = vadd.f32 1.0, %v3508_v42 }
 0x162   : > { %3535 = vrcp.f32 %v939_v40  ;;  %3173 = vmatmul.mubr.msk.bf16.gmra.mxu1 %vm1037_vm0, %v989_v41  ;;  %v942_v45 = vadd.f32 1.0, %v3510_v43 }
 0x163   : > { %v3512_v44 = vpop.eup %3511  ;;  %3537 = vrcp.f32 %v940_v39 }
 0x164   : > { %v3514_v46 = vpop.eup %3513  ;;  %3539 = vrcp.f32 %v942_v45 }
 0x165   : > { %v3516_v47 = vpop.eup %3515  ;;  %v945_v48 = vadd.f32 1.0, %v3514_v46 }
 0x166   : > { %v3518_v49 = vpop.eup %3517 }
 0x167   : > { %v3520_v28 = vpop.eup %3519  ;;  %v943_v51 = vadd.f32 1.0, %v3518_v49  ;;  %3541 = vrcp.f32 %v945_v48 }
 0x168   : > { %v3522_v52 = vpop.eup %3521  ;;  %v990_v53 = vpack.c.bf16 %v3520_v28, %v3512_v44 }
 0x169   : > { %v3524_v54 = vpop.eup %3523  ;;  %3543 = vrcp.f32 %v943_v51  ;;  %v991_v55 = vpack.c.bf16 %v3516_v47, %v3522_v52 }
 0x16a   : > { %v3526_v56 = vpop.eup %3525  ;;  %3176 = vmatprep.mubr.msk.bf16.mxu1 %vm1037_vm0, %v990_v53  ;;  %3545 = vrcp.f32 %v944_v50  ;;  %v948_v0 = vadd.f32 1.0, %v3524_v54 }
 0x16b   : > { %v3528_v57 = vpop.eup %3527  ;;  %v946_v58 = vadd.f32 1.0, %v3526_v56  ;;  %3177 = vmatmul.mubr.msk.bf16.gmra.mxu1 %vm1037_vm0, %v991_v55 }
 0x16c   : > { %v3530_v59 = vpop.eup %3529 }
 0x16d   : > { %v3532_v60 = vpop.eup %3531  ;;  %v949_v61 = vadd.f32 1.0, %v3530_v59  ;;  %3547 = vrcp.f32 %v946_v58 }
 0x16e   : > { %v3534_v62 = vpop.eup %3533 }
 0x16f   : > { %v3536_v63 = vpop.eup %3535  ;;  %v947_v1 = vadd.f32 1.0, %v3534_v62  ;;  %3549 = vrcp.f32 %v949_v61 }
 0x170   : > { %v3538_v2 = vpop.eup %3537  ;;  %v992_v3 = vpack.c.bf16 %v3536_v63, %v3528_v57 }
 0x171   : > { %3551 = vrcp.f32 %v947_v1  ;;  %v993_v4 = vpack.c.bf16 %v3532_v60, %v3538_v2  ;;  %v3540_v5 = vpop.eup %3539 }
 0x172   : > { %3180 = vmatprep.mubr.msk.bf16.mxu1 %vm1037_vm0, %v992_v3  ;;  %3553 = vrcp.f32 %v948_v0 }
 0x173   : > { %3181 = vmatmul.mubr.msk.bf16.gmra.mxu1 %vm1037_vm0, %v993_v4 }
 0x174   : > { %v3542_v6 = vpop.eup %3541 }
 0x176   : > { %v3544_v7 = vpop.eup %3543 }
 0x177   : > { %v994_v8 = vpack.c.bf16 %v3544_v7, %v3540_v5  ;;  %v3546_v9 = vpop.eup %3545 }
 0x178   : > { %v995_v10 = vpack.c.bf16 %v3542_v6, %v3546_v9 }
 0x179   : > { %3184 = vmatprep.mubr.msk.bf16.mxu1 %vm1037_vm0, %v994_v8 }
 0x17a   : > { %v3548_v11 = vpop.eup %3547 }
 0x17b   : > { %3185 = vmatmul.mubr.msk.bf16.gmra.mxu1 %vm1037_vm0, %v995_v10 }
 0x17c   : > { %v3550_v12 = vpop.eup %3549 }
 0x17e   : > { %v3552_v13 = vpop.eup %3551 }
 0x17f   : > { %v996_v14 = vpack.c.bf16 %v3552_v13, %v3548_v11  ;;  %v3554_v15 = vpop.eup %3553 }
 0x180   : > { %v997_v16 = vpack.c.bf16 %v3550_v12, %v3554_v15 }
 0x181   : > { %3188 = vmatprep.mubr.msk.bf16.mxu1 %vm1037_vm0, %v996_v14 }
 0x183   : > { %3189 = vmatmul.mubr.msk.bf16.gmra.mxu1 %vm1037_vm0, %v997_v16 }
 0x20a   : > { %v3162_v20 = vpop.f32.mrf.mxu1 }
 0x20b   : > { %v1129_v21 = vadd.f32 %v3162_v20, %v4342_v19 }
 0x20c   : > { %v1120_v22 = vpop.f32.mrf.mxu1 }
 0x20d   : > { %v1249_v23 = vsub.f32 0.0, %v1129_v21  ;;  %v1121_v24 = vadd.f32 %v4342_v19, %v1120_v22 }
 0x20e   : > { %v3163_v25 = vpop.f32.mrf.mxu1 }
 0x20f   : > { %v1283_v26 = vmul.f32 1.442695, %v1249_v23  ;;  %v1247_v27 = vsub.f32 0.0, %v1121_v24  ;;  %v1132_v30 = vadd.f32 %v3163_v25, %v4342_v19 }
 0x210   : > { %v1123_v31 = vpop.f32.mrf.mxu1 }
 0x211   : > { %3555 = vpow2.f32 %v1283_v26  ;;  %v1279_v32 = vmul.f32 1.442695, %v1247_v27  ;;  %v1250_v33 = vsub.f32 0.0, %v1132_v30  ;;  %v1124_v34 = vadd.f32 %v4342_v19, %v1123_v31 }
 0x212   : > { %v3166_v35 = vpop.f32.mrf.mxu1 }
 0x213   : > { %3557 = vpow2.f32 %v1279_v32  ;;  %v1285_v36 = vmul.f32 1.442695, %v1250_v33  ;;  %v1248_v37 = vsub.f32 0.0, %v1124_v34  ;;  %v1145_v38 = vadd.f32 %v3166_v35, %v4342_v19 }
 0x214   : > { %v1136_v39 = vpop.f32.mrf.mxu1 }
 0x215   : > { %3559 = vpow2.f32 %v1285_v36  ;;  %v1281_v29 = vmul.f32 1.442695, %v1248_v37  ;;  %v1253_v40 = vsub.f32 0.0, %v1145_v38  ;;  %v1137_v41 = vadd.f32 %v4342_v19, %v1136_v39 }
 0x216   : > { %v3167_v42 = vpop.f32.mrf.mxu1 }
 0x217   : > { %3561 = vpow2.f32 %v1281_v29  ;;  %v1291_v43 = vmul.f32 1.442695, %v1253_v40  ;;  %v1251_v44 = vsub.f32 0.0, %v1137_v41  ;;  %v1148_v45 = vadd.f32 %v3167_v42, %v4342_v19 }
 0x218   : > { %v1139_v46 = vpop.f32.mrf.mxu1 }
 0x219   : > { %3563 = vpow2.f32 %v1291_v43  ;;  %v1287_v47 = vmul.f32 1.442695, %v1251_v44  ;;  %v1254_v48 = vsub.f32 0.0, %v1148_v45  ;;  %v1140_v49 = vadd.f32 %v4342_v19, %v1139_v46 }
 0x21a   : > { %v3170_v28 = vpop.f32.mrf.mxu1 }
 0x21b   : > { %3565 = vpow2.f32 %v1287_v47  ;;  %v1293_v50 = vmul.f32 1.442695, %v1254_v48  ;;  %v1252_v51 = vsub.f32 0.0, %v1140_v49  ;;  %v1161_v52 = vadd.f32 %v3170_v28, %v4342_v19 }
 0x21c   : > { %v1152_v53 = vpop.f32.mrf.mxu1 }
 0x21d   : > { %3567 = vpow2.f32 %v1293_v50  ;;  %v1289_v54 = vmul.f32 1.442695, %v1252_v51  ;;  %v1257_v55 = vsub.f32 0.0, %v1161_v52  ;;  %v1153_v56 = vadd.f32 %v4342_v19, %v1152_v53 }
 0x21e   : > { %v3556_v57 = vpop.eup %3555  ;;  %v3171_v58 = vpop.f32.mrf.mxu1 }
 0x21f   : > { %v1345_v59 = vadd.f32 1.0, %v3556_v57  ;;  %3569 = vpow2.f32 %v1289_v54  ;;  %v1299_v60 = vmul.f32 1.442695, %v1257_v55  ;;  %v1255_v61 = vsub.f32 0.0, %v1153_v56 }
 0x220   : > { %v3558_v62 = vpop.eup %3557  ;;  %v1164_v63 = vadd.f32 %v3171_v58, %v4342_v19  ;;  %v1155_v0 = vpop.f32.mrf.mxu1 }
 0x221   : > { %3571 = vrcp.f32 %v1345_v59  ;;  %v1343_v1 = vadd.f32 1.0, %v3558_v62  ;;  %v1295_v2 = vmul.f32 1.442695, %v1255_v61  ;;  %v1156_v3 = vadd.f32 %v4342_v19, %v1155_v0 }
 0x222   : > { %v3560_v4 = vpop.eup %3559  ;;  %3573 = vpow2.f32 %v1299_v60  ;;  %v1258_v5 = vsub.f32 0.0, %v1164_v63  ;;  %v3174_v6 = vpop.f32.mrf.mxu1 }
 0x223   : > { %3575 = vrcp.f32 %v1343_v1  ;;  %v1346_v7 = vadd.f32 1.0, %v3560_v4  ;;  %v1256_v8 = vsub.f32 0.0, %v1156_v3  ;;  %v1177_v9 = vadd.f32 %v3174_v6, %v4342_v19 }
 0x224   : > { %v3562_v10 = vpop.eup %3561  ;;  %3577 = vpow2.f32 %v1295_v2  ;;  %v1301_v11 = vmul.f32 1.442695, %v1258_v5  ;;  %v1168_v12 = vpop.f32.mrf.mxu1 }
 0x225   : > { %3579 = vrcp.f32 %v1346_v7  ;;  %v1344_v13 = vadd.f32 1.0, %v3562_v10  ;;  %v1297_v14 = vmul.f32 1.442695, %v1256_v8  ;;  %v1261_v15 = vsub.f32 0.0, %v1177_v9 }
 0x226   : > { %v3564_v16 = vpop.eup %3563  ;;  %3581 = vpow2.f32 %v1301_v11  ;;  %v1169_v17 = vadd.f32 %v4342_v19, %v1168_v12  ;;  %v3175_v20 = vpop.f32.mrf.mxu1 }
 0x227   : > { %3583 = vrcp.f32 %v1344_v13  ;;  %v1349_v21 = vadd.f32 1.0, %v3564_v16  ;;  %v1307_v22 = vmul.f32 1.442695, %v1261_v15  ;;  %v1180_v23 = vadd.f32 %v3175_v20, %v4342_v19 }
 0x228   : > { %v3566_v24 = vpop.eup %3565  ;;  %3585 = vpow2.f32 %v1297_v14  ;;  %v1259_v25 = vsub.f32 0.0, %v1169_v17  ;;  %v1171_v26 = vpop.f32.mrf.mxu1 }
 0x229   : > { %3587 = vrcp.f32 %v1349_v21  ;;  %v1347_v27 = vadd.f32 1.0, %v3566_v24  ;;  %v1262_v30 = vsub.f32 0.0, %v1180_v23  ;;  %v1172_v31 = vadd.f32 %v4342_v19, %v1171_v26 }
 0x22a   : > { %v3568_v32 = vpop.eup %3567  ;;  %3589 = vpow2.f32 %v1307_v22  ;;  %v1303_v33 = vmul.f32 1.442695, %v1259_v25 }
 0x22b   : > { %3591 = vrcp.f32 %v1347_v27  ;;  %v1350_v34 = vadd.f32 1.0, %v3568_v32  ;;  %v1309_v35 = vmul.f32 1.442695, %v1262_v30  ;;  %v1260_v36 = vsub.f32 0.0, %v1172_v31  ;;  %v3178_v37 = vpop.f32.mrf.mxu1 }
 0x22c   : > { %v3570_v38 = vpop.eup %3569  ;;  %3593 = vpow2.f32 %v1303_v33  ;;  %v1193_v39 = vadd.f32 %v3178_v37, %v4342_v19 }
 0x22d   : > { %3595 = vrcp.f32 %v1350_v34  ;;  %v1348_v29 = vadd.f32 1.0, %v3570_v38  ;;  %v1305_v40 = vmul.f32 1.442695, %v1260_v36  ;;  %v1184_v41 = vpop.f32.mrf.mxu1 }
 0x22e   : > { %v3572_v42 = vpop.eup %3571  ;;  %3597 = vpow2.f32 %v1309_v35  ;;  %v1265_v43 = vsub.f32 0.0, %v1193_v39  ;;  %v1185_v44 = vadd.f32 %v4342_v19, %v1184_v41 }
 0x22f   : > { %v3574_v45 = vpop.eup %3573  ;;  %3599 = vrcp.f32 %v1348_v29  ;;  %v3179_v46 = vpop.f32.mrf.mxu1 }
 0x230   : > { %v3576_v47 = vpop.eup %3575  ;;  %v1353_v48 = vadd.f32 1.0, %v3574_v45  ;;  %3601 = vpow2.f32 %v1305_v40  ;;  %v1315_v49 = vmul.f32 1.442695, %v1265_v43  ;;  %v1263_v28 = vsub.f32 0.0, %v1185_v44 }
 0x231   : > { %v3578_v50 = vpop.eup %3577  ;;  %v1196_v51 = vadd.f32 %v3179_v46, %v4342_v19  ;;  %v1187_v52 = vpop.f32.mrf.mxu1 }
 0x232   : > { %v3580_v53 = vpop.eup %3579  ;;  %3603 = vrcp.f32 %v1353_v48  ;;  %v1351_v54 = vadd.f32 1.0, %v3578_v50  ;;  %v1311_v55 = vmul.f32 1.442695, %v1263_v28  ;;  %v1188_v56 = vadd.f32 %v4342_v19, %v1187_v52 }
 0x233   : > { %v3582_v57 = vpop.eup %3581  ;;  %3605 = vpow2.f32 %v1315_v49  ;;  %v1266_v58 = vsub.f32 0.0, %v1196_v51  ;;  %v3182_v59 = vpop.f32.mrf.mxu1  ;;  %v1408_v4 = vpack.c.bf16 %v3580_v53, %v3572_v42 }
 0x234   : > { %v3584_v60 = vpop.eup %3583  ;;  %3607 = vrcp.f32 %v1351_v54  ;;  %v1354_v61 = vadd.f32 1.0, %v3582_v57  ;;  %v1264_v62 = vsub.f32 0.0, %v1188_v56  ;;  %v1209_v63 = vadd.f32 %v3182_v59, %v4342_v19 }
 0x235   : > { %v3586_v0 = vpop.eup %3585  ;;  %3609 = vpow2.f32 %v1311_v55  ;;  %v1317_v1 = vmul.f32 1.442695, %v1266_v58  ;;  %v1200_v2 = vpop.f32.mrf.mxu1  ;;  %v1407_v3 = vpack.c.bf16 %v3584_v60, %v3576_v47 }
 0x236   : > { %v3588_v5 = vpop.eup %3587  ;;  %3611 = vrcp.f32 %v1354_v61  ;;  %v1352_v6 = vadd.f32 1.0, %v3586_v0  ;;  %v1313_v7 = vmul.f32 1.442695, %v1264_v62  ;;  %v1269_v8 = vsub.f32 0.0, %v1209_v63 }
 0x237   : > { %v3590_v9 = vpop.eup %3589  ;;  %3613 = vpow2.f32 %v1317_v1  ;;  %v1201_v10 = vadd.f32 %v4342_v19, %v1200_v2  ;;  %v3183_v11 = vpop.f32.mrf.mxu1  ;;  %3196 = vmatprep.mubr.msk.bf16.mxu1 %vm1446_vm1, %v1407_v3 }
 0x238   : > { %v3592_v12 = vpop.eup %3591  ;;  %3615 = vrcp.f32 %v1352_v6  ;;  %v1323_v13 = vmul.f32 1.442695, %v1269_v8  ;;  %v1212_v14 = vadd.f32 %v3183_v11, %v4342_v19  ;;  %3197 = vmatmul.mubr.msk.bf16.vlgmr.msra.gmra.mxu1 %vm1446_vm1, %v1408_v4  ;;  %v1357_v25 = vadd.f32 1.0, %v3590_v9 }
 0x239   : > { %v3594_v15 = vpop.eup %3593  ;;  %3617 = vpow2.f32 %v1313_v7  ;;  %v1267_v16 = vsub.f32 0.0, %v1201_v10  ;;  %v1203_v17 = vpop.f32.mrf.mxu1  ;;  %3339 = vmatpush3.bf16.msra.mxu1 %v4334_v18 }
 0x23a   : > { %v3596_v20 = vpop.eup %3595  ;;  %v1355_v21 = vadd.f32 1.0, %v3594_v15  ;;  %v1270_v22 = vsub.f32 0.0, %v1212_v14  ;;  %v1204_v23 = vadd.f32 %v4342_v19, %v1203_v17  ;;  %3619 = vpow2.f32 %v1323_v13 }
 0x23b   : > { %v3598_v24 = vpop.eup %3597  ;;  %v1319_v26 = vmul.f32 1.442695, %v1267_v16  ;;  %v3186_v27 = vpop.f32.mrf.mxu1  ;;  %v1410_v37 = vpack.c.bf16 %v3596_v20, %v3588_v5 }
 0x23c   : > { %v3600_v30 = vpop.eup %3599  ;;  %3621 = vrcp.f32 %v1355_v21  ;;  %v1358_v31 = vadd.f32 1.0, %v3598_v24  ;;  %v1325_v32 = vmul.f32 1.442695, %v1270_v22  ;;  %v1268_v33 = vsub.f32 0.0, %v1204_v23 }
 0x23d   : > { %v3602_v34 = vpop.eup %3601  ;;  %3623 = vpow2.f32 %v1319_v26  ;;  %v1225_v35 = vadd.f32 %v3186_v27, %v4342_v19  ;;  %v1216_v18 = vpop.f32.mrf.mxu1  ;;  %v1409_v36 = vpack.c.bf16 %v3600_v30, %v3592_v12 }
 0x23e   : > { %3625 = vrcp.f32 %v1358_v31  ;;  %v1356_v38 = vadd.f32 1.0, %v3602_v34  ;;  %v1321_v39 = vmul.f32 1.442695, %v1268_v33  ;;  %v1217_v29 = vadd.f32 %v4342_v19, %v1216_v18 }
 0x23f   : > { %v3604_v40 = vpop.eup %3603  ;;  %3627 = vpow2.f32 %v1325_v32  ;;  %v1273_v41 = vsub.f32 0.0, %v1225_v35  ;;  %v3187_v42 = vpop.f32.mrf.mxu1  ;;  %3200 = vmatprep.mubr.msk.bf16.mxu1 %vm1446_vm1, %v1409_v36 }
 0x240   : > { %v3606_v43 = vpop.eup %3605  ;;  %3629 = vrcp.f32 %v1356_v38  ;;  %v1271_v44 = vsub.f32 0.0, %v1217_v29  ;;  %v1228_v45 = vadd.f32 %v3187_v42, %v4342_v19  ;;  %3201 = vmatmul.mubr.msk.bf16.gmra.mxu1 %vm1446_vm1, %v1410_v37 }
 0x241   : > { %v3608_v46 = vpop.eup %3607  ;;  %v1361_v47 = vadd.f32 1.0, %v3606_v43  ;;  %3631 = vpow2.f32 %v1321_v39  ;;  %v1331_v48 = vmul.f32 1.442695, %v1273_v41  ;;  %v1219_v49 = vpop.f32.mrf.mxu1 }
 0x242   : > { %v3610_v28 = vpop.eup %3609  ;;  %3633 = vrcp.f32 %v1357_v25  ;;  %v1327_v50 = vmul.f32 1.442695, %v1271_v44  ;;  %v1274_v51 = vsub.f32 0.0, %v1228_v45  ;;  %v1220_v52 = vadd.f32 %v4342_v19, %v1219_v49 }
 0x243   : > { %v3612_v53 = vpop.eup %3611  ;;  %3635 = vrcp.f32 %v1361_v47  ;;  %v1359_v54 = vadd.f32 1.0, %v3610_v28  ;;  %v3190_v55 = vpop.f32.mrf.mxu1 }
 0x244   : > { %v3614_v56 = vpop.eup %3613  ;;  %3637 = vpow2.f32 %v1331_v48  ;;  %v1333_v57 = vmul.f32 1.442695, %v1274_v51  ;;  %v1272_v58 = vsub.f32 0.0, %v1220_v52  ;;  %v1241_v59 = vadd.f32 %v3190_v55, %v4342_v19 }
 0x245   : > { %v3616_v60 = vpop.eup %3615  ;;  %3639 = vrcp.f32 %v1359_v54  ;;  %v1362_v61 = vadd.f32 1.0, %v3614_v56  ;;  %v1232_v62 = vpop.f32.mrf.mxu1  ;;  %v1412_v6 = vpack.c.bf16 %v3612_v53, %v3604_v40 }
 0x246   : > { %v3618_v63 = vpop.eup %3617  ;;  %3641 = vpow2.f32 %v1327_v50  ;;  %v1329_v0 = vmul.f32 1.442695, %v1272_v58  ;;  %v1277_v1 = vsub.f32 0.0, %v1241_v59  ;;  %v1233_v2 = vadd.f32 %v4342_v19, %v1232_v62 }
 0x247   : > { %3643 = vrcp.f32 %v1362_v61  ;;  %v1360_v3 = vadd.f32 1.0, %v3618_v63  ;;  %v3191_v4 = vpop.f32.mrf.mxu1  ;;  %v1411_v5 = vpack.c.bf16 %v3616_v60, %v3608_v46  ;;  %v3620_v7 = vpop.eup %3619 }
 0x248   : > { %3645 = vpow2.f32 %v1333_v57  ;;  %v1339_v8 = vmul.f32 1.442695, %v1277_v1  ;;  %v1275_v9 = vsub.f32 0.0, %v1233_v2  ;;  %v1244_v10 = vadd.f32 %v3191_v4, %v4342_v19 }
 0x249   : > { %v3622_v11 = vpop.eup %3621  ;;  %3647 = vrcp.f32 %v1360_v3  ;;  %v1365_v12 = vadd.f32 1.0, %v3620_v7  ;;  %3204 = vmatprep.mubr.msk.bf16.mxu1 %vm1446_vm1, %v1411_v5  ;;  %v1235_v13 = vpop.f32.mrf.mxu1 }
 0x24a   : > { %v3624_v14 = vpop.eup %3623  ;;  %3649 = vpow2.f32 %v1329_v0  ;;  %v1335_v15 = vmul.f32 1.442695, %v1275_v9  ;;  %v1278_v16 = vsub.f32 0.0, %v1244_v10  ;;  %v1236_v17 = vadd.f32 %v4342_v19, %v1235_v13  ;;  %3205 = vmatmul.mubr.msk.bf16.gmra.mxu1 %vm1446_vm1, %v1412_v6  ;;  %v4396_v10 = vld [vmem:[%s4698_s6] ss:$0 sm:$0xff] }
 0x24b   : > { %v3626_v20 = vpop.eup %3625  ;;  %3651 = vrcp.f32 %v1365_v12  ;;  %v1363_v21 = vadd.f32 1.0, %v3624_v14 }
 0x24c   : > { %v3628_v22 = vpop.eup %3627  ;;  %3653 = vpow2.f32 %v1339_v8  ;;  %v1341_v23 = vmul.f32 1.442695, %v1278_v16  ;;  %v1276_v24 = vsub.f32 0.0, %v1236_v17 }
 0x24d   : > { %v3630_v25 = vpop.eup %3629  ;;  %3655 = vrcp.f32 %v1363_v21  ;;  %v1366_v26 = vadd.f32 1.0, %v3628_v22 }
 0x24e   : > { %v3632_v27 = vpop.eup %3631  ;;  %3657 = vpow2.f32 %v1335_v15  ;;  %v1337_v30 = vmul.f32 1.442695, %v1276_v24  ;;  %v1413_v31 = vpack.c.bf16 %v3630_v25, %v3622_v11 }
 0x24f   : > { %v3634_v32 = vpop.eup %3633  ;;  %3659 = vrcp.f32 %v1366_v26  ;;  %v1364_v33 = vadd.f32 1.0, %v3632_v27 }
 0x250   : > { %v3636_v19 = vpop.eup %3635  ;;  %3661 = vpow2.f32 %v1341_v23  ;;  %3208 = vmatprep.mubr.msk.bf16.mxu1 %vm1446_vm1, %v1413_v31  ;;  %v1414_v34 = vpack.c.bf16 %v3626_v20, %v3634_v32 }
 0x251   : > { %v3638_v35 = vpop.eup %3637  ;;  %3663 = vrcp.f32 %v1364_v33 }
 0x252   : > { %v3640_v18 = vpop.eup %3639  ;;  %3665 = vpow2.f32 %v1337_v30  ;;  %3209 = vmatmul.mubr.msk.bf16.gmra.mxu1 %vm1446_vm1, %v1414_v34  ;;  %v1369_v42 = vadd.f32 1.0, %v3638_v35 }
 0x253   : > { %v3642_v36 = vpop.eup %3641 }
 0x254   : > { %v3644_v37 = vpop.eup %3643  ;;  %v1367_v38 = vadd.f32 1.0, %v3642_v36 }
 0x255   : > { %v3646_v39 = vpop.eup %3645  ;;  %v1416_v46 = vpack.c.bf16 %v3644_v37, %v3636_v19 }
 0x256   : > { %v3648_v29 = vpop.eup %3647  ;;  %v1370_v40 = vadd.f32 1.0, %v3646_v39  ;;  %3667 = vrcp.f32 %v1367_v38 }
 0x257   : > { %v3650_v41 = vpop.eup %3649  ;;  %v1415_v43 = vpack.c.bf16 %v3648_v29, %v3640_v18 }
 0x258   : > { %v3652_v44 = vpop.eup %3651  ;;  %v1368_v45 = vadd.f32 1.0, %v3650_v41  ;;  %3669 = vrcp.f32 %v1370_v40 }
 0x259   : > { %v3654_v47 = vpop.eup %3653  ;;  %3212 = vmatprep.mubr.msk.bf16.mxu1 %vm1446_vm1, %v1415_v43 }
 0x25a   : > { %v3656_v48 = vpop.eup %3655  ;;  %3671 = vrcp.f32 %v1368_v45  ;;  %3213 = vmatmul.mubr.msk.bf16.gmra.mxu1 %vm1446_vm1, %v1416_v46  ;;  %v1373_v55 = vadd.f32 1.0, %v3654_v47 }
 0x25b   : > { %v3658_v49 = vpop.eup %3657  ;;  %3673 = vrcp.f32 %v1369_v42 }
 0x25c   : > { %v3660_v28 = vpop.eup %3659  ;;  %v1371_v50 = vadd.f32 1.0, %v3658_v49 }
 0x25d   : > { %v3662_v51 = vpop.eup %3661  ;;  %v1418_v58 = vpack.c.bf16 %v3660_v28, %v3652_v44 }
 0x25e   : > { %v3664_v52 = vpop.eup %3663  ;;  %v1374_v53 = vadd.f32 1.0, %v3662_v51  ;;  %3675 = vrcp.f32 %v1371_v50 }
 0x25f   : > { %v3666_v54 = vpop.eup %3665  ;;  %v1417_v56 = vpack.c.bf16 %v3664_v52, %v3656_v48 }
 0x260   : > { %v1372_v57 = vadd.f32 1.0, %v3666_v54  ;;  %3677 = vrcp.f32 %v1374_v53 }
 0x261   : > { %3216 = vmatprep.mubr.msk.bf16.mxu1 %vm1446_vm1, %v1417_v56 }
 0x262   : > { %3679 = vrcp.f32 %v1372_v57  ;;  %3217 = vmatmul.mubr.msk.bf16.gmra.mxu1 %vm1446_vm1, %v1418_v58 }
 0x263   : > { %3681 = vrcp.f32 %v1373_v55  ;;  %v3668_v59 = vpop.eup %3667 }
 0x265   : > { %v3670_v60 = vpop.eup %3669 }
 0x267   : > { %v3672_v61 = vpop.eup %3671 }
 0x268   : > { %v3674_v62 = vpop.eup %3673  ;;  %v1419_v63 = vpack.c.bf16 %v3672_v61, %v3668_v59 }
 0x269   : > { %v1420_v0 = vpack.c.bf16 %v3670_v60, %v3674_v62 }
 0x26a   : > { %3220 = vmatprep.mubr.msk.bf16.mxu1 %vm1446_vm1, %v1419_v63 }
 0x26b   : > { %3221 = vmatmul.mubr.msk.bf16.gmra.mxu1 %vm1446_vm1, %v1420_v0  ;;  %v3676_v1 = vpop.eup %3675 }
 0x26d   : > { %v3678_v2 = vpop.eup %3677 }
 0x26f   : > { %v3680_v3 = vpop.eup %3679 }
 0x270   : > { %v3682_v4 = vpop.eup %3681  ;;  %v1421_v5 = vpack.c.bf16 %v3680_v3, %v3676_v1 }
 0x271   : > { %v1422_v6 = vpack.c.bf16 %v3678_v2, %v3682_v4 }
 0x272   : > { %3224 = vmatprep.mubr.msk.bf16.mxu1 %vm1446_vm1, %v1421_v5 }
 0x273   : > { %3225 = vmatmul.mubr.msk.bf16.gmra.mxu1 %vm1446_vm1, %v1422_v6 }
 0x2f8   : > { %v3198_v7 = vpop.f32.mrf.mxu1 }
 0x2f9   : > { %v1538_v15 = vadd.f32 %v3198_v7, %v4396_v10 }
 0x2fa   : > { %v1529_v8 = vpop.f32.mrf.mxu1 }
 0x2fb   : > { %v1530_v13 = vadd.f32 %v4396_v10, %v1529_v8 }
 0x2fc   : > { %v3199_v9 = vpop.f32.mrf.mxu1 }
 0x2fd   : > { %v1541_v11 = vadd.f32 %v3199_v9, %v4396_v10 }
 0x2fe   : > { %v1532_v12 = vpop.f32.mrf.mxu1 }
 0x2ff   : > { %v1533_v14 = vadd.f32 %v4396_v10, %v1532_v12  ;;  %v1657_v20 = vpack.c.bf16 %v1541_v11, %v1538_v15 }
 0x300   : > { %v3202_v16 = vpop.f32.mrf.mxu1 }
 0x301   : > { %v1656_v17 = vpack.c.bf16 %v1533_v14, %v1530_v13  ;;  %v1554_v27 = vadd.f32 %v3202_v16, %v4396_v10 }
 0x302   : > { %v1545_v21 = vpop.f32.mrf.mxu1 }
 0x303   : > { %3230 = vmatprep.mubr.msk.bf16.mxu0 %vm1687_vm2, %v1656_v17  ;;  %v1546_v25 = vadd.f32 %v4396_v10, %v1545_v21 }
 0x304   : > { %v3203_v22 = vpop.f32.mrf.mxu1  ;;  %3231 = vmatmul.mubr.msk.bf16.vlgmr.msra.gmra.mxu0 %vm1687_vm2, %v1657_v20 }
 0x305   : > { %v1557_v23 = vadd.f32 %v3203_v22, %v4396_v10 }
 0x306   : > { %v1548_v24 = vpop.f32.mrf.mxu1 }
 0x307   : > { %v1549_v26 = vadd.f32 %v4396_v10, %v1548_v24  ;;  %v1659_v31 = vpack.c.bf16 %v1557_v23, %v1554_v27  ;;  %v3421_v27 = vld [vmem:[%s4701_s9 + $0x8] sm:$0xff]  }
 0x308   : > { %3262 = vmatprep.subr.bf16.mxu1 %v3421_v27 }
 0x309   : > { %v1658_v30 = vpack.c.bf16 %v1549_v26, %v1546_v25 }
 0x30a   : > { %v3206_v32 = vpop.f32.mrf.mxu1 }
 0x30b   : > { %3234 = vmatprep.mubr.msk.bf16.mxu0 %vm1687_vm2, %v1658_v30  ;;  %v1570_v37 = vadd.f32 %v3206_v32, %v4396_v10  ;;  %v3422_v30 = vld [vmem:[%s4701_s9] sm:$0xff]  }
 0x30c   : > { %v1561_v33 = vpop.f32.mrf.mxu1  ;;  %3235 = vmatmul.mubr.msk.bf16.gmra.mxu0 %vm1687_vm2, %v1659_v31  ;;  %v4458_v31 = vld [vmem:[%s4700_s8] ss:$0 sm:$0xff] }
 0x30d   : > { %v1562_v18 = vadd.f32 %v4396_v10, %v1561_v33 }
 0x30e   : > { %v3207_v19 = vpop.f32.mrf.mxu1 }
 0x30f   : > { %v1573_v34 = vadd.f32 %v3207_v19, %v4396_v10 }
 0x310   : > { %v1564_v35 = vpop.f32.mrf.mxu1 }
 0x311   : > { %v1565_v36 = vadd.f32 %v4396_v10, %v1564_v35  ;;  %v1661_v29 = vpack.c.bf16 %v1573_v34, %v1570_v37 }
 0x312   : > { %v3210_v38 = vpop.f32.mrf.mxu1 }
 0x313   : > { %v1660_v39 = vpack.c.bf16 %v1565_v36, %v1562_v18  ;;  %v1586_v46 = vadd.f32 %v3210_v38, %v4396_v10 }
 0x314   : > { %v1577_v40 = vpop.f32.mrf.mxu1 }
 0x315   : > { %3238 = vmatprep.mubr.msk.bf16.mxu0 %vm1687_vm2, %v1660_v39  ;;  %v1578_v44 = vadd.f32 %v4396_v10, %v1577_v40 }
 0x316   : > { %v3211_v41 = vpop.f32.mrf.mxu1  ;;  %3239 = vmatmul.mubr.msk.bf16.gmra.mxu0 %vm1687_vm2, %v1661_v29 }
 0x317   : > { %v1589_v42 = vadd.f32 %v3211_v41, %v4396_v10 }
 0x318   : > { %v1580_v43 = vpop.f32.mrf.mxu1 }
 0x319   : > { %v1581_v45 = vadd.f32 %v4396_v10, %v1580_v43  ;;  %v1663_v49 = vpack.c.bf16 %v1589_v42, %v1586_v46 }
 0x31a   : > { %v3214_v47 = vpop.f32.mrf.mxu1 }
 0x31b   : > { %v1662_v48 = vpack.c.bf16 %v1581_v45, %v1578_v44  ;;  %v1602_v55 = vadd.f32 %v3214_v47, %v4396_v10 }
 0x31c   : > { %v1593_v28 = vpop.f32.mrf.mxu1 }
 0x31d   : > { %3242 = vmatprep.mubr.msk.bf16.mxu0 %vm1687_vm2, %v1662_v48  ;;  %v1594_v53 = vadd.f32 %v4396_v10, %v1593_v28 }
 0x31e   : > { %v3215_v50 = vpop.f32.mrf.mxu1  ;;  %3243 = vmatmul.mubr.msk.bf16.gmra.mxu0 %vm1687_vm2, %v1663_v49 }
 0x31f   : > { %v1605_v51 = vadd.f32 %v3215_v50, %v4396_v10 }
 0x320   : > { %v1596_v52 = vpop.f32.mrf.mxu1 }
 0x321   : > { %v1597_v54 = vadd.f32 %v4396_v10, %v1596_v52  ;;  %v1665_v58 = vpack.c.bf16 %v1605_v51, %v1602_v55 }
 0x322   : > { %v3218_v56 = vpop.f32.mrf.mxu1 }
 0x323   : > { %v1664_v57 = vpack.c.bf16 %v1597_v54, %v1594_v53  ;;  %v1618_v1 = vadd.f32 %v3218_v56, %v4396_v10 }
 0x324   : > { %v1609_v59 = vpop.f32.mrf.mxu1 }
 0x325   : > { %3246 = vmatprep.mubr.msk.bf16.mxu0 %vm1687_vm2, %v1664_v57  ;;  %v1610_v63 = vadd.f32 %v4396_v10, %v1609_v59 }
 0x326   : > { %v3219_v60 = vpop.f32.mrf.mxu1  ;;  %3247 = vmatmul.mubr.msk.bf16.gmra.mxu0 %vm1687_vm2, %v1665_v58 }
 0x327   : > { %v1621_v61 = vadd.f32 %v3219_v60, %v4396_v10 }
 0x328   : > { %v1612_v62 = vpop.f32.mrf.mxu1 }
 0x329   : > { %v1613_v0 = vadd.f32 %v4396_v10, %v1612_v62  ;;  %v1667_v4 = vpack.c.bf16 %v1621_v61, %v1618_v1 }
 0x32b   : > { %v1666_v2 = vpack.c.bf16 %v1613_v0, %v1610_v63  ;;  %v3222_v3 = vpop.f32.mrf.mxu1 }
 0x32c   : > { %v1634_v12 = vadd.f32 %v3222_v3, %v4396_v10 }
 0x32d   : > { %v1625_v5 = vpop.f32.mrf.mxu1  ;;  %3250 = vmatprep.mubr.msk.bf16.mxu0 %vm1687_vm2, %v1666_v2 }
 0x32e   : > { %3251 = vmatmul.mubr.msk.bf16.gmra.mxu0 %vm1687_vm2, %v1667_v4  ;;  %v1626_v9 = vadd.f32 %v4396_v10, %v1625_v5 }
 0x32f   : > { %v3223_v6 = vpop.f32.mrf.mxu1 }
 0x330   : > { %v1637_v7 = vadd.f32 %v3223_v6, %v4396_v10 }
 0x331   : > { %v1628_v8 = vpop.f32.mrf.mxu1 }
 0x332   : > { %v1629_v11 = vadd.f32 %v4396_v10, %v1628_v8  ;;  %v1669_v15 = vpack.c.bf16 %v1637_v7, %v1634_v12 }
 0x333   : > { %v3226_v13 = vpop.f32.mrf.mxu1 }
 0x334   : > { %v1668_v14 = vpack.c.bf16 %v1629_v11, %v1626_v9  ;;  %v1650_v24 = vadd.f32 %v3226_v13, %v4396_v10 }
 0x335   : > { %v1641_v16 = vpop.f32.mrf.mxu1 }
 0x336   : > { %3254 = vmatprep.mubr.msk.bf16.mxu0 %vm1687_vm2, %v1668_v14  ;;  %v1642_v22 = vadd.f32 %v4396_v10, %v1641_v16 }
 0x337   : > { %v3227_v17 = vpop.f32.mrf.mxu1  ;;  %3255 = vmatmul.mubr.msk.bf16.gmra.mxu0 %vm1687_vm2, %v1669_v15 }
 0x338   : > { %v1653_v20 = vadd.f32 %v3227_v17, %v4396_v10 }
 0x339   : > { %v1644_v21 = vpop.f32.mrf.mxu1 }
 0x33a   : > { %v1645_v23 = vadd.f32 %v4396_v10, %v1644_v21  ;;  %v1671_v26 = vpack.c.bf16 %v1653_v20, %v1650_v24  ;;  %v3423_v10 = vld [vmem:[%s4703_s11 + $0x18] sm:$0xff]  }
 0x33b   : > { %3298 = vmatprep.subr.bf16.mxu0 %v3423_v10 }
 0x33c   : > { %v1670_v25 = vpack.c.bf16 %v1645_v23, %v1642_v22  ;;  %3299 = vmatpush3.bf16.msra.mxu0 %v3423_v10 }
 0x33e   : > { %3258 = vmatprep.mubr.msk.bf16.mxu1 %vm1687_vm2, %v1670_v25 }
 0x33f   : > { %3259 = vmatmul.mubr.msk.bf16.vlgmr.msra.gmra.mxu1 %vm1687_vm2, %v1671_v26 }
 0x340   : > { %3263 = vmatpush3.bf16.msra.mxu1 %v3421_v27 }
 0x341   : > { %3264 = vmatprep.subr.bf16.mxu1 %v3422_v30 }
 0x344   : > { %3265 = vmatpush3.bf16.msra.mxu1 %v3422_v30 }
 0x3c4   : > { %v3232_v32 = vpop.f32.mrf.mxu0 }
 0x3c5   : > { %v1779_v33 = vadd.f32 %v3232_v32, %v4458_v31 }
 0x3c6   : > { %v1770_v19 = vpop.f32.mrf.mxu0 }
 0x3c7   : > { %v1899_v34 = vsub.f32 0.0, %v1779_v33  ;;  %v1771_v35 = vadd.f32 %v4458_v31, %v1770_v19 }
 0x3c8   : > { %v3233_v18 = vpop.f32.mrf.mxu0 }
 0x3c9   : > { %v1933_v36 = vmul.f32 1.442695, %v1899_v34  ;;  %v1897_v37 = vsub.f32 0.0, %v1771_v35  ;;  %v1782_v38 = vadd.f32 %v3233_v18, %v4458_v31 }
 0x3ca   : > { %v1773_v39 = vpop.f32.mrf.mxu0 }
 0x3cb   : > { %3683 = vpow2.f32 %v1933_v36  ;;  %v1929_v29 = vmul.f32 1.442695, %v1897_v37  ;;  %v1900_v40 = vsub.f32 0.0, %v1782_v38  ;;  %v1774_v41 = vadd.f32 %v4458_v31, %v1773_v39 }
 0x3cc   : > { %v3236_v42 = vpop.f32.mrf.mxu0 }
 0x3cd   : > { %3685 = vpow2.f32 %v1929_v29  ;;  %v1935_v43 = vmul.f32 1.442695, %v1900_v40  ;;  %v1898_v44 = vsub.f32 0.0, %v1774_v41  ;;  %v1795_v45 = vadd.f32 %v3236_v42, %v4458_v31 }
 0x3ce   : > { %v1786_v46 = vpop.f32.mrf.mxu0 }
 0x3cf   : > { %3687 = vpow2.f32 %v1935_v43  ;;  %v1931_v47 = vmul.f32 1.442695, %v1898_v44  ;;  %v1903_v48 = vsub.f32 0.0, %v1795_v45  ;;  %v1787_v49 = vadd.f32 %v4458_v31, %v1786_v46 }
 0x3d0   : > { %v3237_v28 = vpop.f32.mrf.mxu0 }
 0x3d1   : > { %3689 = vpow2.f32 %v1931_v47  ;;  %v1941_v50 = vmul.f32 1.442695, %v1903_v48  ;;  %v1901_v51 = vsub.f32 0.0, %v1787_v49  ;;  %v1798_v52 = vadd.f32 %v3237_v28, %v4458_v31 }
 0x3d2   : > { %v1789_v53 = vpop.f32.mrf.mxu0 }
 0x3d3   : > { %3691 = vpow2.f32 %v1941_v50  ;;  %v1937_v54 = vmul.f32 1.442695, %v1901_v51  ;;  %v1904_v55 = vsub.f32 0.0, %v1798_v52  ;;  %v1790_v56 = vadd.f32 %v4458_v31, %v1789_v53 }
 0x3d5   : > { %3693 = vpow2.f32 %v1937_v54  ;;  %v1943_v57 = vmul.f32 1.442695, %v1904_v55  ;;  %v1902_v58 = vsub.f32 0.0, %v1790_v56 }
 0x3d6   : > { %v3240_v59 = vpop.f32.mrf.mxu0 }
 0x3d7   : > { %3695 = vpow2.f32 %v1943_v57  ;;  %v1939_v60 = vmul.f32 1.442695, %v1902_v58  ;;  %v1811_v61 = vadd.f32 %v3240_v59, %v4458_v31 }
 0x3d8   : > { %v3684_v62 = vpop.eup %3683  ;;  %v1802_v63 = vpop.f32.mrf.mxu0 }
 0x3d9   : > { %v1995_v0 = vadd.f32 1.0, %v3684_v62  ;;  %3697 = vpow2.f32 %v1939_v60  ;;  %v1907_v1 = vsub.f32 0.0, %v1811_v61  ;;  %v1803_v2 = vadd.f32 %v4458_v31, %v1802_v63 }
 0x3da   : > { %v3686_v3 = vpop.eup %3685  ;;  %v3241_v4 = vpop.f32.mrf.mxu0 }
 0x3db   : > { %v1993_v5 = vadd.f32 1.0, %v3686_v3  ;;  %v1949_v6 = vmul.f32 1.442695, %v1907_v1  ;;  %v1905_v7 = vsub.f32 0.0, %v1803_v2  ;;  %3699 = vrcp.f32 %v1995_v0 }
 0x3dc   : > { %v3688_v8 = vpop.eup %3687  ;;  %v1814_v9 = vadd.f32 %v3241_v4, %v4458_v31  ;;  %v1805_v11 = vpop.f32.mrf.mxu0 }
 0x3dd   : > { %3701 = vrcp.f32 %v1993_v5  ;;  %v1996_v12 = vadd.f32 1.0, %v3688_v8  ;;  %v1945_v13 = vmul.f32 1.442695, %v1905_v7  ;;  %v1806_v14 = vadd.f32 %v4458_v31, %v1805_v11 }
 0x3de   : > { %v3690_v15 = vpop.eup %3689  ;;  %3703 = vpow2.f32 %v1949_v6  ;;  %v1908_v16 = vsub.f32 0.0, %v1814_v9  ;;  %v3244_v17 = vpop.f32.mrf.mxu0 }
 0x3df   : > { %3705 = vrcp.f32 %v1996_v12  ;;  %v1994_v20 = vadd.f32 1.0, %v3690_v15  ;;  %v1906_v21 = vsub.f32 0.0, %v1806_v14  ;;  %v1827_v22 = vadd.f32 %v3244_v17, %v4458_v31 }
 0x3e0   : > { %v3692_v23 = vpop.eup %3691  ;;  %3707 = vpow2.f32 %v1945_v13  ;;  %v1951_v24 = vmul.f32 1.442695, %v1908_v16  ;;  %v1818_v25 = vpop.f32.mrf.mxu0 }
 0x3e1   : > { %3709 = vrcp.f32 %v1994_v20  ;;  %v1999_v26 = vadd.f32 1.0, %v3692_v23  ;;  %v1947_v27 = vmul.f32 1.442695, %v1906_v21  ;;  %v1911_v30 = vsub.f32 0.0, %v1827_v22 }
 0x3e2   : > { %v3694_v10 = vpop.eup %3693  ;;  %3711 = vpow2.f32 %v1951_v24  ;;  %v1819_v32 = vadd.f32 %v4458_v31, %v1818_v25  ;;  %v3245_v33 = vpop.f32.mrf.mxu0 }
 0x3e3   : > { %3713 = vrcp.f32 %v1999_v26  ;;  %v1997_v19 = vadd.f32 1.0, %v3694_v10  ;;  %v1957_v34 = vmul.f32 1.442695, %v1911_v30  ;;  %v1830_v35 = vadd.f32 %v3245_v33, %v4458_v31 }
 0x3e4   : > { %v3696_v18 = vpop.eup %3695  ;;  %3715 = vpow2.f32 %v1947_v27  ;;  %v1909_v36 = vsub.f32 0.0, %v1819_v32  ;;  %v1821_v37 = vpop.f32.mrf.mxu0 }
 0x3e5   : > { %3717 = vrcp.f32 %v1997_v19  ;;  %v2000_v38 = vadd.f32 1.0, %v3696_v18  ;;  %v1912_v39 = vsub.f32 0.0, %v1830_v35  ;;  %v1822_v29 = vadd.f32 %v4458_v31, %v1821_v37 }
 0x3e6   : > { %v3698_v40 = vpop.eup %3697  ;;  %3719 = vpow2.f32 %v1957_v34  ;;  %v1953_v41 = vmul.f32 1.442695, %v1909_v36  ;;  %v3248_v42 = vpop.f32.mrf.mxu0 }
 0x3e7   : > { %3721 = vrcp.f32 %v2000_v38  ;;  %v1998_v43 = vadd.f32 1.0, %v3698_v40  ;;  %v1959_v44 = vmul.f32 1.442695, %v1912_v39  ;;  %v1910_v45 = vsub.f32 0.0, %v1822_v29 }
 0x3e8   : > { %3723 = vpow2.f32 %v1953_v41  ;;  %v1843_v46 = vadd.f32 %v3248_v42, %v4458_v31  ;;  %v1834_v47 = vpop.f32.mrf.mxu0  ;;  %v3700_v48 = vpop.eup %3699 }
 0x3e9   : > { %3725 = vrcp.f32 %v1998_v43  ;;  %v1955_v49 = vmul.f32 1.442695, %v1910_v45  ;;  %v1835_v28 = vadd.f32 %v4458_v31, %v1834_v47 }
 0x3ea   : > { %v3702_v50 = vpop.eup %3701  ;;  %3727 = vpow2.f32 %v1959_v44  ;;  %v1915_v51 = vsub.f32 0.0, %v1843_v46  ;;  %v3249_v52 = vpop.f32.mrf.mxu0 }
 0x3eb   : > { %v3704_v53 = vpop.eup %3703  ;;  %3729 = vpow2.f32 %v1955_v49  ;;  %v1913_v54 = vsub.f32 0.0, %v1835_v28  ;;  %v1846_v55 = vadd.f32 %v3249_v52, %v4458_v31 }
 0x3ec   : > { %v3706_v56 = vpop.eup %3705  ;;  %v2003_v57 = vadd.f32 1.0, %v3704_v53  ;;  %v1965_v58 = vmul.f32 1.442695, %v1915_v51  ;;  %v1837_v59 = vpop.f32.mrf.mxu0 }
 0x3ed   : > { %v3708_v60 = vpop.eup %3707  ;;  %v1961_v61 = vmul.f32 1.442695, %v1913_v54  ;;  %v1916_v62 = vsub.f32 0.0, %v1846_v55  ;;  %v1838_v63 = vadd.f32 %v4458_v31, %v1837_v59  ;;  %v2058_v12 = vpack.c.bf16 %v3706_v56, %v3700_v48 }
 0x3ee   : > { %v3710_v0 = vpop.eup %3709  ;;  %3731 = vrcp.f32 %v2003_v57  ;;  %v2001_v1 = vadd.f32 1.0, %v3708_v60  ;;  %v3252_v2 = vpop.f32.mrf.mxu0 }
 0x3ef   : > { %v3712_v3 = vpop.eup %3711  ;;  %3733 = vpow2.f32 %v1965_v58  ;;  %v1967_v4 = vmul.f32 1.442695, %v1916_v62  ;;  %v1914_v5 = vsub.f32 0.0, %v1838_v63  ;;  %v1859_v6 = vadd.f32 %v3252_v2, %v4458_v31 }
 0x3f0   : > { %v3714_v7 = vpop.eup %3713  ;;  %3735 = vrcp.f32 %v2001_v1  ;;  %v2004_v8 = vadd.f32 1.0, %v3712_v3  ;;  %v1850_v9 = vpop.f32.mrf.mxu0  ;;  %v2057_v11 = vpack.c.bf16 %v3710_v0, %v3702_v50 }
 0x3f1   : > { %v3716_v13 = vpop.eup %3715  ;;  %3737 = vpow2.f32 %v1961_v61  ;;  %v1963_v14 = vmul.f32 1.442695, %v1914_v5  ;;  %v1919_v15 = vsub.f32 0.0, %v1859_v6  ;;  %v1851_v16 = vadd.f32 %v4458_v31, %v1850_v9 }
 0x3f2   : > { %v3718_v17 = vpop.eup %3717  ;;  %3739 = vrcp.f32 %v2004_v8  ;;  %v2002_v20 = vadd.f32 1.0, %v3716_v13  ;;  %v3253_v21 = vpop.f32.mrf.mxu0  ;;  %3266 = vmatprep.mubr.msk.bf16.mxu1 %vm1446_vm1, %v2057_v11 }
 0x3f3   : > { %v3720_v22 = vpop.eup %3719  ;;  %3741 = vpow2.f32 %v1967_v4  ;;  %v1973_v23 = vmul.f32 1.442695, %v1919_v15  ;;  %v1917_v24 = vsub.f32 0.0, %v1851_v16  ;;  %v1862_v25 = vadd.f32 %v3253_v21, %v4458_v31  ;;  %3267 = vmatmul.mubr.msk.bf16.vlgmr.msra.gmra.mxu1 %vm1446_vm1, %v2058_v12 }
 0x3f4   : > { %v3722_v26 = vpop.eup %3721  ;;  %3743 = vrcp.f32 %v2002_v20  ;;  %v1853_v27 = vpop.f32.mrf.mxu0  ;;  %v2007_v45 = vadd.f32 1.0, %v3720_v22 }
 0x3f5   : > { %v3724_v30 = vpop.eup %3723  ;;  %3745 = vpow2.f32 %v1963_v14  ;;  %v1969_v10 = vmul.f32 1.442695, %v1917_v24  ;;  %v1920_v32 = vsub.f32 0.0, %v1862_v25  ;;  %v1854_v33 = vadd.f32 %v4458_v31, %v1853_v27 }
 0x3f6   : > { %v3726_v19 = vpop.eup %3725  ;;  %v2005_v34 = vadd.f32 1.0, %v3724_v30  ;;  %3747 = vpow2.f32 %v1973_v23  ;;  %v2060_v44 = vpack.c.bf16 %v3722_v26, %v3714_v7 }
 0x3f7   : > { %v3728_v35 = vpop.eup %3727  ;;  %v1918_v18 = vsub.f32 0.0, %v1854_v33  ;;  %v3256_v36 = vpop.f32.mrf.mxu0  ;;  %v2059_v37 = vpack.c.bf16 %v3726_v19, %v3718_v17  ;;  %v1975_v29 = vmul.f32 1.442695, %v1920_v32 }
 0x3f8   : > { %v3730_v38 = vpop.eup %3729  ;;  %3749 = vrcp.f32 %v2005_v34  ;;  %v2008_v39 = vadd.f32 1.0, %v3728_v35  ;;  %v1875_v40 = vadd.f32 %v3256_v36, %v4458_v31 }
 0x3f9   : > { %v2006_v41 = vadd.f32 1.0, %v3730_v38  ;;  %3751 = vpow2.f32 %v1969_v10  ;;  %v1971_v42 = vmul.f32 1.442695, %v1918_v18  ;;  %v1866_v43 = vpop.f32.mrf.mxu0  ;;  %3270 = vmatprep.mubr.msk.bf16.mxu1 %vm1446_vm1, %v2059_v37 }
 0x3fa   : > { %3753 = vrcp.f32 %v2008_v39  ;;  %v1923_v46 = vsub.f32 0.0, %v1875_v40  ;;  %v1867_v47 = vadd.f32 %v4458_v31, %v1866_v43 }
 0x3fb   : > { %v3732_v48 = vpop.eup %3731  ;;  %3755 = vrcp.f32 %v2006_v41  ;;  %v3257_v49 = vpop.f32.mrf.mxu0  ;;  %3271 = vmatmul.mubr.msk.bf16.gmra.mxu1 %vm1446_vm1, %v2060_v44 }
 0x3fc   : > { %v3734_v28 = vpop.eup %3733  ;;  %3757 = vpow2.f32 %v1975_v29  ;;  %v1981_v50 = vmul.f32 1.442695, %v1923_v46  ;;  %v1921_v51 = vsub.f32 0.0, %v1867_v47  ;;  %v1878_v52 = vadd.f32 %v3257_v49, %v4458_v31 }
 0x3fd   : > { %v3736_v53 = vpop.eup %3735  ;;  %3759 = vpow2.f32 %v1971_v42  ;;  %v1869_v54 = vpop.f32.mrf.mxu0  ;;  %v2011_v3 = vadd.f32 1.0, %v3734_v28 }
 0x3fe   : > { %v3738_v55 = vpop.eup %3737  ;;  %3761 = vrcp.f32 %v2007_v45  ;;  %v1977_v56 = vmul.f32 1.442695, %v1921_v51  ;;  %v1924_v57 = vsub.f32 0.0, %v1878_v52  ;;  %v1870_v58 = vadd.f32 %v4458_v31, %v1869_v54 }
 0x3ff   : > { %v3740_v59 = vpop.eup %3739  ;;  %v2009_v60 = vadd.f32 1.0, %v3738_v55  ;;  %3763 = vpow2.f32 %v1981_v50  ;;  %v3260_v61 = vpop.f32.mrf.mxu1 }
 0x400   : > { %v3742_v62 = vpop.eup %3741  ;;  %3765 = vpow2.f32 %v1977_v56  ;;  %v1983_v63 = vmul.f32 1.442695, %v1924_v57  ;;  %v1922_v0 = vsub.f32 0.0, %v1870_v58  ;;  %v1891_v1 = vadd.f32 %v3260_v61, %v4458_v31 }
 0x401   : > { %v3744_v2 = vpop.eup %3743  ;;  %3767 = vrcp.f32 %v2009_v60  ;;  %v2012_v4 = vadd.f32 1.0, %v3742_v62  ;;  %v1882_v5 = vpop.f32.mrf.mxu1  ;;  %v2062_v14 = vpack.c.bf16 %v3740_v59, %v3732_v48 }
 0x402   : > { %v3746_v6 = vpop.eup %3745  ;;  %3769 = vpow2.f32 %v1983_v63  ;;  %v1979_v7 = vmul.f32 1.442695, %v1922_v0  ;;  %v1927_v8 = vsub.f32 0.0, %v1891_v1  ;;  %v1883_v9 = vadd.f32 %v4458_v31, %v1882_v5 }
 0x403   : > { %3771 = vrcp.f32 %v2012_v4  ;;  %v2010_v11 = vadd.f32 1.0, %v3746_v6  ;;  %v3261_v12 = vpop.f32.mrf.mxu1  ;;  %v2061_v13 = vpack.c.bf16 %v3744_v2, %v3736_v53  ;;  %v3748_v15 = vpop.eup %3747 }
 0x404   : > { %3773 = vpow2.f32 %v1979_v7  ;;  %v1989_v16 = vmul.f32 1.442695, %v1927_v8  ;;  %v1925_v17 = vsub.f32 0.0, %v1883_v9  ;;  %v1894_v20 = vadd.f32 %v3261_v12, %v4458_v31 }
 0x405   : > { %v3750_v21 = vpop.eup %3749  ;;  %3775 = vrcp.f32 %v2010_v11  ;;  %3274 = vmatprep.mubr.msk.bf16.mxu1 %vm1446_vm1, %v2061_v13  ;;  %v1885_v22 = vpop.f32.mrf.mxu1  ;;  %v2015_v18 = vadd.f32 1.0, %v3748_v15  ;;  %v3424_v15 = vld [vmem:[%s4703_s11 + $0x10] sm:$0xff]  }
 0x406   : > { %v3752_v23 = vpop.eup %3751  ;;  %3777 = vrcp.f32 %v2011_v3  ;;  %v1985_v24 = vmul.f32 1.442695, %v1925_v17  ;;  %v1928_v25 = vsub.f32 0.0, %v1894_v20  ;;  %v1886_v26 = vadd.f32 %v4458_v31, %v1885_v22  ;;  %3275 = vmatmul.mubr.msk.bf16.gmra.mxu1 %vm1446_vm1, %v2062_v14  ;;  %3300 = vmatprep.subr.bf16.mxu0 %v3424_v15  ;;  %v3426_v17 = vld [vmem:[%s4703_s11] sm:$0xff]  }
 0x407   : > { %v3754_v27 = vpop.eup %3753  ;;  %v2013_v30 = vadd.f32 1.0, %v3752_v23  ;;  %3779 = vpow2.f32 %v1989_v16  ;;  %3301 = vmatpush3.bf16.msra.mxu0 %v3424_v15  ;;  %v3425_v16 = vld [vmem:[%s4703_s11 + $0x8] sm:$0xff]   ;;  %v4520_v20 = vld [vmem:[%s4702_s10] ss:$0 sm:$0xff] }
 0x408   : > { %v3756_v10 = vpop.eup %3755  ;;  %v1991_v32 = vmul.f32 1.442695, %v1928_v25  ;;  %v1926_v33 = vsub.f32 0.0, %v1886_v26  ;;  %3781 = vpow2.f32 %v1985_v24  ;;  %3302 = vmatprep.subr.bf16.mxu0 %v3425_v16 }
 0x409   : > { %v3758_v19 = vpop.eup %3757  ;;  %v2063_v34 = vpack.c.bf16 %v3756_v10, %v3750_v21 }
 0x40a   : > { %v3760_v35 = vpop.eup %3759  ;;  %v2016_v36 = vadd.f32 1.0, %v3758_v19  ;;  %3783 = vpow2.f32 %v1991_v32  ;;  %v1987_v39 = vmul.f32 1.442695, %v1926_v33 }
 0x40b   : > { %v3762_v37 = vpop.eup %3761  ;;  %3785 = vrcp.f32 %v2013_v30  ;;  %v2014_v38 = vadd.f32 1.0, %v3760_v35  ;;  %3278 = vmatprep.mubr.msk.bf16.mxu1 %vm1446_vm1, %v2063_v34  ;;  %3303 = vmatpush3.bf16.msra.mxu0 %v3425_v16 }
 0x40c   : > { %v3764_v31 = vpop.eup %3763  ;;  %3787 = vrcp.f32 %v2016_v36  ;;  %v2064_v29 = vpack.c.bf16 %v3754_v27, %v3762_v37  ;;  %3304 = vmatprep.subr.bf16.mxu0 %v3426_v17 }
 0x40d   : > { %v3766_v40 = vpop.eup %3765  ;;  %3789 = vrcp.f32 %v2014_v38  ;;  %v2019_v48 = vadd.f32 1.0, %v3764_v31 }
 0x40e   : > { %v3768_v41 = vpop.eup %3767  ;;  %3791 = vrcp.f32 %v2015_v18  ;;  %v2017_v42 = vadd.f32 1.0, %v3766_v40  ;;  %3279 = vmatmul.mubr.msk.bf16.gmra.mxu1 %vm1446_vm1, %v2064_v29 }
 0x40f   : > { %v3770_v43 = vpop.eup %3769  ;;  %3793 = vpow2.f32 %v1987_v39  ;;  %3305 = vmatpush3.bf16.msra.mxu0 %v3426_v17 }
 0x410   : > { %v3772_v44 = vpop.eup %3771  ;;  %v2020_v45 = vadd.f32 1.0, %v3770_v43  ;;  %3795 = vrcp.f32 %v2017_v42 }
 0x411   : > { %v3774_v46 = vpop.eup %3773 }
 0x412   : > { %v3776_v47 = vpop.eup %3775  ;;  %v2018_v49 = vadd.f32 1.0, %v3774_v46  ;;  %3797 = vrcp.f32 %v2020_v45 }
 0x413   : > { %v3778_v28 = vpop.eup %3777  ;;  %v2065_v50 = vpack.c.bf16 %v3776_v47, %v3768_v41 }
 0x414   : > { %3799 = vrcp.f32 %v2018_v49  ;;  %v2066_v51 = vpack.c.bf16 %v3772_v44, %v3778_v28  ;;  %v3780_v52 = vpop.eup %3779 }
 0x415   : > { %3282 = vmatprep.mubr.msk.bf16.mxu1 %vm1446_vm1, %v2065_v50  ;;  %v3782_v53 = vpop.eup %3781  ;;  %3801 = vrcp.f32 %v2019_v48  ;;  %v2023_v63 = vadd.f32 1.0, %v3780_v52 }
 0x416   : > { %3283 = vmatmul.mubr.msk.bf16.gmra.mxu1 %vm1446_vm1, %v2066_v51  ;;  %v2021_v57 = vadd.f32 1.0, %v3782_v53 }
 0x417   : > { %v3784_v54 = vpop.eup %3783 }
 0x418   : > { %v3786_v55 = vpop.eup %3785  ;;  %v2024_v59 = vadd.f32 1.0, %v3784_v54  ;;  %3803 = vrcp.f32 %v2021_v57 }
 0x419   : > { %v3788_v56 = vpop.eup %3787 }
 0x41a   : > { %v3790_v58 = vpop.eup %3789  ;;  %3805 = vrcp.f32 %v2024_v59 }
 0x41b   : > { %v3792_v60 = vpop.eup %3791  ;;  %v2067_v61 = vpack.c.bf16 %v3790_v58, %v3786_v55 }
 0x41c   : > { %v3794_v62 = vpop.eup %3793  ;;  %v2068_v0 = vpack.c.bf16 %v3788_v56, %v3792_v60 }
 0x41d   : > { %v2022_v1 = vadd.f32 1.0, %v3794_v62  ;;  %3286 = vmatprep.mubr.msk.bf16.mxu1 %vm1446_vm1, %v2067_v61  ;;  %v3796_v2 = vpop.eup %3795 }
 0x41e   : > { %3287 = vmatmul.mubr.msk.bf16.gmra.mxu1 %vm1446_vm1, %v2068_v0 }
 0x41f   : > { %3807 = vrcp.f32 %v2022_v1  ;;  %v3798_v3 = vpop.eup %3797 }
 0x420   : > { %3809 = vrcp.f32 %v2023_v63 }
 0x421   : > { %v3800_v4 = vpop.eup %3799 }
 0x422   : > { %v2069_v5 = vpack.c.bf16 %v3800_v4, %v3796_v2  ;;  %v3802_v6 = vpop.eup %3801 }
 0x423   : > { %v2070_v7 = vpack.c.bf16 %v3798_v3, %v3802_v6 }
 0x424   : > { %3290 = vmatprep.mubr.msk.bf16.mxu1 %vm1446_vm1, %v2069_v5 }
 0x425   : > { %v3804_v8 = vpop.eup %3803 }
 0x426   : > { %3291 = vmatmul.mubr.msk.bf16.gmra.mxu1 %vm1446_vm1, %v2070_v7 }
 0x427   : > { %v3806_v9 = vpop.eup %3805 }
 0x42c   : > { %v3808_v11 = vpop.eup %3807 }
 0x42d   : > { %v3810_v12 = vpop.eup %3809  ;;  %v2071_v13 = vpack.c.bf16 %v3808_v11, %v3804_v8 }
 0x42e   : > { %v2072_v14 = vpack.c.bf16 %v3806_v9, %v3810_v12 }
 0x42f   : > { %3294 = vmatprep.mubr.msk.bf16.mxu1 %vm1446_vm1, %v2071_v13 }
 0x430   : > { %3295 = vmatmul.mubr.msk.bf16.gmra.mxu1 %vm1446_vm1, %v2072_v14 }
 0x4b3   : > { %v3268_v21 = vpop.f32.mrf.mxu1 }
 0x4b4   : > { %v2187_v22 = vadd.f32 %v3268_v21, %v4520_v20 }
 0x4b5   : > { %v2178_v23 = vpop.f32.mrf.mxu1 }
 0x4b6   : > { %v2307_v24 = vsub.f32 0.0, %v2187_v22  ;;  %v2179_v25 = vadd.f32 %v4520_v20, %v2178_v23 }
 0x4b7   : > { %v3269_v26 = vpop.f32.mrf.mxu1 }
 0x4b8   : > { %v2341_v27 = vmul.f32 1.442695, %v2307_v24  ;;  %v2305_v30 = vsub.f32 0.0, %v2179_v25  ;;  %v2190_v10 = vadd.f32 %v3269_v26, %v4520_v20 }
 0x4b9   : > { %v2181_v32 = vpop.f32.mrf.mxu1 }
 0x4ba   : > { %3811 = vpow2.f32 %v2341_v27  ;;  %v2337_v33 = vmul.f32 1.442695, %v2305_v30  ;;  %v2308_v19 = vsub.f32 0.0, %v2190_v10  ;;  %v2182_v34 = vadd.f32 %v4520_v20, %v2181_v32 }
 0x4bb   : > { %v3272_v35 = vpop.f32.mrf.mxu1 }
 0x4bc   : > { %3813 = vpow2.f32 %v2337_v33  ;;  %v2343_v18 = vmul.f32 1.442695, %v2308_v19  ;;  %v2306_v36 = vsub.f32 0.0, %v2182_v34  ;;  %v2203_v37 = vadd.f32 %v3272_v35, %v4520_v20 }
 0x4bd   : > { %v2194_v38 = vpop.f32.mrf.mxu1 }
 0x4be   : > { %3815 = vpow2.f32 %v2343_v18  ;;  %v2339_v39 = vmul.f32 1.442695, %v2306_v36  ;;  %v2311_v31 = vsub.f32 0.0, %v2203_v37  ;;  %v2195_v29 = vadd.f32 %v4520_v20, %v2194_v38 }
 0x4bf   : > { %v3273_v40 = vpop.f32.mrf.mxu1 }
 0x4c0   : > { %3817 = vpow2.f32 %v2339_v39  ;;  %v2349_v41 = vmul.f32 1.442695, %v2311_v31  ;;  %v2309_v42 = vsub.f32 0.0, %v2195_v29  ;;  %v2206_v43 = vadd.f32 %v3273_v40, %v4520_v20 }
 0x4c1   : > { %v2197_v44 = vpop.f32.mrf.mxu1 }
 0x4c2   : > { %3819 = vpow2.f32 %v2349_v41  ;;  %v2345_v45 = vmul.f32 1.442695, %v2309_v42  ;;  %v2312_v46 = vsub.f32 0.0, %v2206_v43  ;;  %v2198_v47 = vadd.f32 %v4520_v20, %v2197_v44 }
 0x4c4   : > { %3821 = vpow2.f32 %v2345_v45  ;;  %v2351_v48 = vmul.f32 1.442695, %v2312_v46  ;;  %v2310_v49 = vsub.f32 0.0, %v2198_v47 }
 0x4c6   : > { %3823 = vpow2.f32 %v2351_v48  ;;  %v2347_v28 = vmul.f32 1.442695, %v2310_v49  ;;  %v3276_v50 = vpop.f32.mrf.mxu1 }
 0x4c7   : > { %v3812_v51 = vpop.eup %3811  ;;  %v2219_v52 = vadd.f32 %v3276_v50, %v4520_v20 }
 0x4c8   : > { %v2403_v53 = vadd.f32 1.0, %v3812_v51  ;;  %3825 = vpow2.f32 %v2347_v28  ;;  %v2210_v54 = vpop.f32.mrf.mxu1 }
 0x4c9   : > { %v3814_v55 = vpop.eup %3813  ;;  %v2315_v56 = vsub.f32 0.0, %v2219_v52  ;;  %v2211_v57 = vadd.f32 %v4520_v20, %v2210_v54 }
 0x4ca   : > { %v2401_v58 = vadd.f32 1.0, %v3814_v55  ;;  %v3277_v59 = vpop.f32.mrf.mxu1  ;;  %3827 = vrcp.f32 %v2403_v53 }
 0x4cb   : > { %v3816_v60 = vpop.eup %3815  ;;  %v2357_v61 = vmul.f32 1.442695, %v2315_v56  ;;  %v2313_v62 = vsub.f32 0.0, %v2211_v57  ;;  %v2222_v63 = vadd.f32 %v3277_v59, %v4520_v20 }
 0x4cc   : > { %3829 = vrcp.f32 %v2401_v58  ;;  %v2404_v0 = vadd.f32 1.0, %v3816_v60  ;;  %v2213_v1 = vpop.f32.mrf.mxu1 }
 0x4cd   : > { %v3818_v2 = vpop.eup %3817  ;;  %3831 = vpow2.f32 %v2357_v61  ;;  %v2353_v3 = vmul.f32 1.442695, %v2313_v62  ;;  %v2316_v4 = vsub.f32 0.0, %v2222_v63  ;;  %v2214_v5 = vadd.f32 %v4520_v20, %v2213_v1 }
 0x4ce   : > { %3833 = vrcp.f32 %v2404_v0  ;;  %v2402_v6 = vadd.f32 1.0, %v3818_v2  ;;  %v3280_v7 = vpop.f32.mrf.mxu1 }
 0x4cf   : > { %v3820_v8 = vpop.eup %3819  ;;  %3835 = vpow2.f32 %v2353_v3  ;;  %v2359_v9 = vmul.f32 1.442695, %v2316_v4  ;;  %v2314_v11 = vsub.f32 0.0, %v2214_v5  ;;  %v2235_v12 = vadd.f32 %v3280_v7, %v4520_v20 }
 0x4d0   : > { %3837 = vrcp.f32 %v2402_v6  ;;  %v2407_v13 = vadd.f32 1.0, %v3820_v8  ;;  %v2226_v14 = vpop.f32.mrf.mxu1 }
 0x4d1   : > { %v3822_v15 = vpop.eup %3821  ;;  %3839 = vpow2.f32 %v2359_v9  ;;  %v2355_v16 = vmul.f32 1.442695, %v2314_v11  ;;  %v2319_v17 = vsub.f32 0.0, %v2235_v12  ;;  %v2227_v21 = vadd.f32 %v4520_v20, %v2226_v14 }
 0x4d2   : > { %3841 = vrcp.f32 %v2407_v13  ;;  %v2405_v22 = vadd.f32 1.0, %v3822_v15  ;;  %v3281_v23 = vpop.f32.mrf.mxu1 }
 0x4d3   : > { %v3824_v24 = vpop.eup %3823  ;;  %3843 = vpow2.f32 %v2355_v16  ;;  %v2365_v25 = vmul.f32 1.442695, %v2319_v17  ;;  %v2317_v26 = vsub.f32 0.0, %v2227_v21  ;;  %v2238_v27 = vadd.f32 %v3281_v23, %v4520_v20 }
 0x4d4   : > { %3845 = vrcp.f32 %v2405_v22  ;;  %v2408_v30 = vadd.f32 1.0, %v3824_v24  ;;  %v2229_v10 = vpop.f32.mrf.mxu1 }
 0x4d5   : > { %v3826_v32 = vpop.eup %3825  ;;  %3847 = vpow2.f32 %v2365_v25  ;;  %v2361_v33 = vmul.f32 1.442695, %v2317_v26  ;;  %v2320_v19 = vsub.f32 0.0, %v2238_v27  ;;  %v2230_v34 = vadd.f32 %v4520_v20, %v2229_v10 }
 0x4d6   : > { %3849 = vrcp.f32 %v2408_v30  ;;  %v2406_v35 = vadd.f32 1.0, %v3826_v32  ;;  %v3284_v18 = vpop.f32.mrf.mxu1 }
 0x4d7   : > { %3851 = vpow2.f32 %v2361_v33  ;;  %v2367_v36 = vmul.f32 1.442695, %v2320_v19  ;;  %v2318_v37 = vsub.f32 0.0, %v2230_v34  ;;  %v2251_v38 = vadd.f32 %v3284_v18, %v4520_v20  ;;  %v3828_v39 = vpop.eup %3827 }
 0x4d8   : > { %3853 = vrcp.f32 %v2406_v35  ;;  %v2242_v31 = vpop.f32.mrf.mxu1 }
 0x4d9   : > { %v3830_v29 = vpop.eup %3829  ;;  %3855 = vpow2.f32 %v2367_v36  ;;  %v2363_v40 = vmul.f32 1.442695, %v2318_v37  ;;  %v2323_v41 = vsub.f32 0.0, %v2251_v38  ;;  %v2243_v42 = vadd.f32 %v4520_v20, %v2242_v31 }
 0x4da   : > { %v3832_v43 = vpop.eup %3831  ;;  %v3285_v44 = vpop.f32.mrf.mxu1 }
 0x4db   : > { %v3834_v45 = vpop.eup %3833  ;;  %v2411_v46 = vadd.f32 1.0, %v3832_v43  ;;  %3857 = vpow2.f32 %v2363_v40  ;;  %v2373_v47 = vmul.f32 1.442695, %v2323_v41  ;;  %v2321_v48 = vsub.f32 0.0, %v2243_v42 }
 0x4dc   : > { %v3836_v49 = vpop.eup %3835  ;;  %v2254_v28 = vadd.f32 %v3285_v44, %v4520_v20  ;;  %v2245_v50 = vpop.f32.mrf.mxu1  ;;  %v2466_v59 = vpack.c.bf16 %v3834_v45, %v3828_v39 }
 0x4dd   : > { %v3838_v51 = vpop.eup %3837  ;;  %3859 = vrcp.f32 %v2411_v46  ;;  %v2409_v52 = vadd.f32 1.0, %v3836_v49  ;;  %v2369_v53 = vmul.f32 1.442695, %v2321_v48  ;;  %v2246_v54 = vadd.f32 %v4520_v20, %v2245_v50 }
 0x4de   : > { %v3840_v55 = vpop.eup %3839  ;;  %3861 = vpow2.f32 %v2373_v47  ;;  %v2324_v56 = vsub.f32 0.0, %v2254_v28  ;;  %v3288_v57 = vpop.f32.mrf.mxu1  ;;  %v2465_v58 = vpack.c.bf16 %v3838_v51, %v3830_v29 }
 0x4df   : > { %v3842_v60 = vpop.eup %3841  ;;  %3863 = vrcp.f32 %v2409_v52  ;;  %v2412_v61 = vadd.f32 1.0, %v3840_v55  ;;  %v2322_v62 = vsub.f32 0.0, %v2246_v54  ;;  %v2267_v63 = vadd.f32 %v3288_v57, %v4520_v20 }
 0x4e0   : > { %v3844_v0 = vpop.eup %3843  ;;  %3865 = vpow2.f32 %v2369_v53  ;;  %v2375_v1 = vmul.f32 1.442695, %v2324_v56  ;;  %v2258_v2 = vpop.f32.mrf.mxu1  ;;  %3306 = vmatprep.mubr.msk.bf16.mxu0 %vm1037_vm0, %v2465_v58 }
 0x4e1   : > { %v3846_v3 = vpop.eup %3845  ;;  %3867 = vrcp.f32 %v2412_v61  ;;  %v2410_v4 = vadd.f32 1.0, %v3844_v0  ;;  %v2371_v5 = vmul.f32 1.442695, %v2322_v62  ;;  %v2327_v6 = vsub.f32 0.0, %v2267_v63  ;;  %3307 = vmatmul.mubr.msk.bf16.vlgmr.msra.gmra.mxu0 %vm1037_vm0, %v2466_v59 }
 0x4e2   : > { %v3848_v7 = vpop.eup %3847  ;;  %3869 = vpow2.f32 %v2375_v1  ;;  %v2259_v8 = vadd.f32 %v4520_v20, %v2258_v2  ;;  %v3289_v9 = vpop.f32.mrf.mxu1 }
 0x4e3   : > { %v3850_v11 = vpop.eup %3849  ;;  %3871 = vrcp.f32 %v2410_v4  ;;  %v2415_v12 = vadd.f32 1.0, %v3848_v7  ;;  %v2381_v13 = vmul.f32 1.442695, %v2327_v6  ;;  %v2270_v14 = vadd.f32 %v3289_v9, %v4520_v20 }
 0x4e4   : > { %v3852_v15 = vpop.eup %3851  ;;  %3873 = vpow2.f32 %v2371_v5  ;;  %v2325_v16 = vsub.f32 0.0, %v2259_v8  ;;  %v2261_v17 = vpop.f32.mrf.mxu1  ;;  %v2468_v10 = vpack.c.bf16 %v3850_v11, %v3842_v60 }
 0x4e5   : > { %v3854_v21 = vpop.eup %3853  ;;  %3875 = vrcp.f32 %v2415_v12  ;;  %v2413_v22 = vadd.f32 1.0, %v3852_v15  ;;  %v2328_v23 = vsub.f32 0.0, %v2270_v14  ;;  %v2262_v24 = vadd.f32 %v4520_v20, %v2261_v17 }
 0x4e6   : > { %v3856_v25 = vpop.eup %3855  ;;  %3877 = vpow2.f32 %v2381_v13  ;;  %v2377_v26 = vmul.f32 1.442695, %v2325_v16  ;;  %v3292_v27 = vpop.f32.mrf.mxu1  ;;  %v2467_v30 = vpack.c.bf16 %v3854_v21, %v3846_v3 }
 0x4e7   : > { %3879 = vrcp.f32 %v2413_v22  ;;  %v2416_v32 = vadd.f32 1.0, %v3856_v25  ;;  %v2383_v33 = vmul.f32 1.442695, %v2328_v23  ;;  %v2326_v19 = vsub.f32 0.0, %v2262_v24 }
 0x4e8   : > { %v3858_v34 = vpop.eup %3857  ;;  %3881 = vpow2.f32 %v2377_v26  ;;  %v2283_v35 = vadd.f32 %v3292_v27, %v4520_v20  ;;  %v2274_v18 = vpop.f32.mrf.mxu1  ;;  %3310 = vmatprep.mubr.msk.bf16.mxu0 %vm1037_vm0, %v2467_v30 }
 0x4e9   : > { %3883 = vrcp.f32 %v2416_v32  ;;  %v2414_v36 = vadd.f32 1.0, %v3858_v34  ;;  %v2379_v37 = vmul.f32 1.442695, %v2326_v19  ;;  %v2275_v38 = vadd.f32 %v4520_v20, %v2274_v18  ;;  %3311 = vmatmul.mubr.msk.bf16.gmra.mxu0 %vm1037_vm0, %v2468_v10 }
 0x4ea   : > { %v3860_v39 = vpop.eup %3859  ;;  %3885 = vpow2.f32 %v2383_v33  ;;  %v2331_v31 = vsub.f32 0.0, %v2283_v35  ;;  %v3293_v29 = vpop.f32.mrf.mxu1 }
 0x4eb   : > { %v3862_v40 = vpop.eup %3861  ;;  %3887 = vrcp.f32 %v2414_v36  ;;  %v2329_v41 = vsub.f32 0.0, %v2275_v38  ;;  %v2286_v42 = vadd.f32 %v3293_v29, %v4520_v20 }
 0x4ec   : > { %v3864_v43 = vpop.eup %3863  ;;  %v2419_v44 = vadd.f32 1.0, %v3862_v40  ;;  %3889 = vpow2.f32 %v2379_v37  ;;  %v2389_v45 = vmul.f32 1.442695, %v2331_v31  ;;  %v2277_v46 = vpop.f32.mrf.mxu1 }
 0x4ed   : > { %v3866_v47 = vpop.eup %3865  ;;  %v2385_v48 = vmul.f32 1.442695, %v2329_v41  ;;  %v2332_v49 = vsub.f32 0.0, %v2286_v42  ;;  %v2278_v28 = vadd.f32 %v4520_v20, %v2277_v46 }
 0x4ee   : > { %v3868_v50 = vpop.eup %3867  ;;  %3891 = vrcp.f32 %v2419_v44  ;;  %v2417_v51 = vadd.f32 1.0, %v3866_v47 }
 0x4ef   : > { %v3870_v52 = vpop.eup %3869  ;;  %3893 = vpow2.f32 %v2389_v45  ;;  %v2391_v53 = vmul.f32 1.442695, %v2332_v49  ;;  %v2330_v54 = vsub.f32 0.0, %v2278_v28  ;;  %v2470_v1 = vpack.c.bf16 %v3868_v50, %v3860_v39 }
 0x4f0   : > { %v3872_v55 = vpop.eup %3871  ;;  %3895 = vrcp.f32 %v2417_v51  ;;  %v2420_v56 = vadd.f32 1.0, %v3870_v52  ;;  %v3296_v57 = vpop.f32.mrf.mxu1 }
 0x4f1   : > { %v3874_v58 = vpop.eup %3873  ;;  %3897 = vpow2.f32 %v2385_v48  ;;  %v2387_v59 = vmul.f32 1.442695, %v2330_v54  ;;  %v2299_v60 = vadd.f32 %v3296_v57, %v4520_v20  ;;  %v2469_v61 = vpack.c.bf16 %v3872_v55, %v3864_v43 }
 0x4f2   : > { %v3876_v62 = vpop.eup %3875  ;;  %3899 = vrcp.f32 %v2420_v56  ;;  %v2418_v63 = vadd.f32 1.0, %v3874_v58  ;;  %v2290_v0 = vpop.f32.mrf.mxu1 }
 0x4f3   : > { %v3878_v2 = vpop.eup %3877  ;;  %3901 = vpow2.f32 %v2391_v53  ;;  %v2335_v3 = vsub.f32 0.0, %v2299_v60  ;;  %v2291_v4 = vadd.f32 %v4520_v20, %v2290_v0  ;;  %3314 = vmatprep.mubr.msk.bf16.mxu0 %vm1037_vm0, %v2469_v61 }
 0x4f4   : > { %v3880_v5 = vpop.eup %3879  ;;  %3903 = vrcp.f32 %v2418_v63  ;;  %v2423_v6 = vadd.f32 1.0, %v3878_v2  ;;  %v3297_v7 = vpop.f32.mrf.mxu1  ;;  %3315 = vmatmul.mubr.msk.bf16.gmra.mxu0 %vm1037_vm0, %v2470_v1 }
 0x4f5   : > { %v3882_v8 = vpop.eup %3881  ;;  %3905 = vpow2.f32 %v2387_v59  ;;  %v2397_v9 = vmul.f32 1.442695, %v2335_v3  ;;  %v2333_v11 = vsub.f32 0.0, %v2291_v4  ;;  %v2302_v12 = vadd.f32 %v3297_v7, %v4520_v20  ;;  %v4574_v4 = vld [vmem:[%s4704_s12] ss:$0 sm:$0xff] }
 0x4f6   : > { %v3884_v13 = vpop.eup %3883  ;;  %3907 = vrcp.f32 %v2423_v6  ;;  %v2421_v14 = vadd.f32 1.0, %v3882_v8  ;;  %v2293_v15 = vpop.f32.mrf.mxu1 }
 0x4f7   : > { %v3886_v16 = vpop.eup %3885  ;;  %3909 = vpow2.f32 %v2397_v9  ;;  %v2393_v17 = vmul.f32 1.442695, %v2333_v11  ;;  %v2336_v21 = vsub.f32 0.0, %v2302_v12  ;;  %v2294_v22 = vadd.f32 %v4520_v20, %v2293_v15 }
 0x4f8   : > { %v3888_v23 = vpop.eup %3887  ;;  %3911 = vrcp.f32 %v2421_v14  ;;  %v2424_v24 = vadd.f32 1.0, %v3886_v16  ;;  %v2472_v32 = vpack.c.bf16 %v3884_v13, %v3876_v62 }
 0x4f9   : > { %v3890_v25 = vpop.eup %3889  ;;  %3913 = vpow2.f32 %v2393_v17  ;;  %v2399_v26 = vmul.f32 1.442695, %v2336_v21  ;;  %v2334_v27 = vsub.f32 0.0, %v2294_v22  ;;  %v2471_v30 = vpack.c.bf16 %v3888_v23, %v3880_v5 }
 0x4fa   : > { %3915 = vrcp.f32 %v2424_v24  ;;  %v2422_v10 = vadd.f32 1.0, %v3890_v25 }
 0x4fb   : > { %v3892_v33 = vpop.eup %3891  ;;  %3917 = vpow2.f32 %v2399_v26  ;;  %v2395_v19 = vmul.f32 1.442695, %v2334_v27  ;;  %3318 = vmatprep.mubr.msk.bf16.mxu0 %vm1037_vm0, %v2471_v30 }
 0x4fc   : > { %v3894_v34 = vpop.eup %3893  ;;  %3919 = vrcp.f32 %v2422_v10  ;;  %3319 = vmatmul.mubr.msk.bf16.gmra.mxu0 %vm1037_vm0, %v2472_v32 }
 0x4fd   : > { %v3896_v20 = vpop.eup %3895  ;;  %3921 = vpow2.f32 %v2395_v19  ;;  %v2427_v29 = vadd.f32 1.0, %v3894_v34 }
 0x4fe   : > { %v3898_v35 = vpop.eup %3897 }
 0x4ff   : > { %v3900_v18 = vpop.eup %3899  ;;  %v2425_v36 = vadd.f32 1.0, %v3898_v35 }
 0x500   : > { %v3902_v37 = vpop.eup %3901  ;;  %v2474_v43 = vpack.c.bf16 %v3900_v18, %v3892_v33 }
 0x501   : > { %v3904_v38 = vpop.eup %3903  ;;  %v2428_v39 = vadd.f32 1.0, %v3902_v37  ;;  %3923 = vrcp.f32 %v2425_v36 }
 0x502   : > { %v3906_v31 = vpop.eup %3905  ;;  %v2473_v40 = vpack.c.bf16 %v3904_v38, %v3896_v20 }
 0x503   : > { %v3908_v41 = vpop.eup %3907  ;;  %v2426_v42 = vadd.f32 1.0, %v3906_v31  ;;  %3925 = vrcp.f32 %v2428_v39 }
 0x504   : > { %v3910_v44 = vpop.eup %3909  ;;  %3322 = vmatprep.mubr.msk.bf16.mxu0 %vm1037_vm0, %v2473_v40 }
 0x505   : > { %v3912_v45 = vpop.eup %3911  ;;  %3927 = vrcp.f32 %v2426_v42  ;;  %3323 = vmatmul.mubr.msk.bf16.gmra.mxu0 %vm1037_vm0, %v2474_v43  ;;  %v2431_v52 = vadd.f32 1.0, %v3910_v44 }
 0x506   : > { %v3914_v46 = vpop.eup %3913  ;;  %3929 = vrcp.f32 %v2427_v29 }
 0x507   : > { %v3916_v47 = vpop.eup %3915  ;;  %v2429_v48 = vadd.f32 1.0, %v3914_v46 }
 0x508   : > { %v3918_v49 = vpop.eup %3917  ;;  %v2476_v55 = vpack.c.bf16 %v3916_v47, %v3908_v41 }
 0x509   : > { %v3920_v28 = vpop.eup %3919  ;;  %v2432_v50 = vadd.f32 1.0, %v3918_v49  ;;  %3931 = vrcp.f32 %v2429_v48 }
 0x50a   : > { %v3922_v51 = vpop.eup %3921  ;;  %v2475_v53 = vpack.c.bf16 %v3920_v28, %v3912_v45 }
 0x50b   : > { %v2430_v54 = vadd.f32 1.0, %v3922_v51  ;;  %3933 = vrcp.f32 %v2432_v50 }
 0x50c   : > { %3326 = vmatprep.mubr.msk.bf16.mxu0 %vm1037_vm0, %v2475_v53 }
 0x50d   : > { %3935 = vrcp.f32 %v2430_v54  ;;  %3327 = vmatmul.mubr.msk.bf16.gmra.mxu0 %vm1037_vm0, %v2476_v55 }
 0x50e   : > { %3937 = vrcp.f32 %v2431_v52  ;;  %v3924_v56 = vpop.eup %3923 }
 0x510   : > { %v3926_v57 = vpop.eup %3925 }
 0x512   : > { %v3928_v58 = vpop.eup %3927 }
 0x513   : > { %v3930_v59 = vpop.eup %3929  ;;  %v2477_v60 = vpack.c.bf16 %v3928_v58, %v3924_v56 }
 0x514   : > { %v2478_v61 = vpack.c.bf16 %v3926_v57, %v3930_v59 }
 0x515   : > { %3330 = vmatprep.mubr.msk.bf16.mxu0 %vm1037_vm0, %v2477_v60 }
 0x516   : > { %3331 = vmatmul.mubr.msk.bf16.gmra.mxu0 %vm1037_vm0, %v2478_v61  ;;  %v3932_v62 = vpop.eup %3931 }
 0x518   : > { %v3934_v63 = vpop.eup %3933 }
 0x51a   : > { %v3936_v0 = vpop.eup %3935 }
 0x51b   : > { %v3938_v1 = vpop.eup %3937  ;;  %v2479_v2 = vpack.c.bf16 %v3936_v0, %v3932_v62 }
 0x51c   : > { %v2480_v3 = vpack.c.bf16 %v3934_v63, %v3938_v1 }
 0x51d   : > { %3334 = vmatprep.mubr.msk.bf16.mxu0 %vm1037_vm0, %v2479_v2 }
 0x51e   : > { %3335 = vmatmul.mubr.msk.bf16.gmra.mxu0 %vm1037_vm0, %v2480_v3 }
 0x5a1   : > { %v3308_v5 = vpop.f32.mrf.mxu0 }
 0x5a2   : > { %v2611_v6 = vadd.f32 %v3308_v5, %v4574_v4 }
 0x5a3   : > { %v2602_v7 = vpop.f32.mrf.mxu0 }
 0x5a4   : > { %2731 = vst [vmem:[%s4577_s22 + $0x10] sm:$0xff] %v2611_v6  ;;  %v2603_v8 = vadd.f32 %v4574_v4, %v2602_v7 }
 0x5a5   : > { %v3309_v9 = vpop.f32.mrf.mxu0 }
 0x5a6   : > { %2729 = vst [vmem:[%s4577_s22] sm:$0xff] %v2603_v8  ;;  %v2614_v11 = vadd.f32 %v3309_v9, %v4574_v4 }
 0x5a7   : > { %v2605_v12 = vpop.f32.mrf.mxu0 }
 0x5a8   : > { %2732 = vst [vmem:[%s4577_s22 + $0x18] sm:$0xff] %v2614_v11  ;;  %v2606_v13 = vadd.f32 %v4574_v4, %v2605_v12 }
 0x5a9   : > { %v3312_v14 = vpop.f32.mrf.mxu0 }
 0x5aa   : > { %2730 = vst [vmem:[%s4577_s22 + $0x8] sm:$0xff] %v2606_v13  ;;  %v2627_v15 = vadd.f32 %v3312_v14, %v4574_v4 }
 0x5ab   : > { %v2618_v16 = vpop.f32.mrf.mxu0 }
 0x5ac   : > { %2735 = vst [vmem:[%s4577_s22 + $0x30] sm:$0xff] %v2627_v15  ;;  %v2619_v17 = vadd.f32 %v4574_v4, %v2618_v16 }
 0x5ad   : > { %v3313_v21 = vpop.f32.mrf.mxu0 }
 0x5ae   : > { %2733 = vst [vmem:[%s4577_s22 + $0x20] sm:$0xff] %v2619_v17  ;;  %v2630_v22 = vadd.f32 %v3313_v21, %v4574_v4 }
 0x5af   : > { %v2621_v23 = vpop.f32.mrf.mxu0 }
 0x5b0   : > { %2736 = vst [vmem:[%s4577_s22 + $0x38] sm:$0xff] %v2630_v22  ;;  %v2622_v24 = vadd.f32 %v4574_v4, %v2621_v23 }
 0x5b2   : > { %2734 = vst [vmem:[%s4577_s22 + $0x28] sm:$0xff] %v2622_v24 }
 0x5b4   : > { %v3316_v25 = vpop.f32.mrf.mxu0 }
 0x5b5   : > { %v2643_v26 = vadd.f32 %v3316_v25, %v4574_v4 }
 0x5b6   : > { %v2634_v27 = vpop.f32.mrf.mxu0 }
 0x5b7   : > { %2739 = vst [vmem:[%s4577_s22 + $0x50] sm:$0xff] %v2643_v26  ;;  %v2635_v30 = vadd.f32 %v4574_v4, %v2634_v27 }
 0x5b8   : > { %v3317_v10 = vpop.f32.mrf.mxu0 }
 0x5b9   : > { %2737 = vst [vmem:[%s4577_s22 + $0x40] sm:$0xff] %v2635_v30  ;;  %v2646_v32 = vadd.f32 %v3317_v10, %v4574_v4 }
 0x5ba   : > { %v2637_v33 = vpop.f32.mrf.mxu0 }
 0x5bb   : > { %2740 = vst [vmem:[%s4577_s22 + $0x58] sm:$0xff] %v2646_v32  ;;  %v2638_v19 = vadd.f32 %v4574_v4, %v2637_v33 }
 0x5bc   : > { %v3320_v34 = vpop.f32.mrf.mxu0 }
 0x5bd   : > { %2738 = vst [vmem:[%s4577_s22 + $0x48] sm:$0xff] %v2638_v19  ;;  %v2659_v20 = vadd.f32 %v3320_v34, %v4574_v4 }
 0x5be   : > { %v2650_v35 = vpop.f32.mrf.mxu0 }
 0x5bf   : > { %2743 = vst [vmem:[%s4577_s22 + $0x70] sm:$0xff] %v2659_v20  ;;  %v2651_v18 = vadd.f32 %v4574_v4, %v2650_v35 }
 0x5c0   : > { %v3321_v36 = vpop.f32.mrf.mxu0 }
 0x5c1   : > { %2741 = vst [vmem:[%s4577_s22 + $0x60] sm:$0xff] %v2651_v18  ;;  %v2662_v37 = vadd.f32 %v3321_v36, %v4574_v4 }
 0x5c2   : > { %v2653_v38 = vpop.f32.mrf.mxu0 }
 0x5c3   : > { %2744 = vst [vmem:[%s4577_s22 + $0x78] sm:$0xff] %v2662_v37  ;;  %v2654_v39 = vadd.f32 %v4574_v4, %v2653_v38 }
 0x5c5   : > { %2742 = vst [vmem:[%s4577_s22 + $0x68] sm:$0xff] %v2654_v39  ;;  %v3324_v31 = vpop.f32.mrf.mxu0 }
 0x5c6   : > { %v2675_v29 = vadd.f32 %v3324_v31, %v4574_v4 }
 0x5c7   : > { %v2666_v40 = vpop.f32.mrf.mxu0 }
 0x5c8   : > { %2747 = vst [vmem:[%s4577_s22 + $0x90] sm:$0xff] %v2675_v29  ;;  %v2667_v41 = vadd.f32 %v4574_v4, %v2666_v40 }
 0x5c9   : > { %v3325_v42 = vpop.f32.mrf.mxu0 }
 0x5ca   : > { %2745 = vst [vmem:[%s4577_s22 + $0x80] sm:$0xff] %v2667_v41  ;;  %v2678_v43 = vadd.f32 %v3325_v42, %v4574_v4 }
 0x5cb   : > { %v2669_v44 = vpop.f32.mrf.mxu0 }
 0x5cc   : > { %2748 = vst [vmem:[%s4577_s22 + $0x98] sm:$0xff] %v2678_v43  ;;  %v2670_v45 = vadd.f32 %v4574_v4, %v2669_v44 }
 0x5cd   : > { %v3328_v46 = vpop.f32.mrf.mxu0 }
 0x5ce   : > { %2746 = vst [vmem:[%s4577_s22 + $0x88] sm:$0xff] %v2670_v45  ;;  %v2691_v47 = vadd.f32 %v3328_v46, %v4574_v4 }
 0x5cf   : > { %v2682_v48 = vpop.f32.mrf.mxu0 }
 0x5d0   : > { %2751 = vst [vmem:[%s4577_s22 + $0xb0] sm:$0xff] %v2691_v47  ;;  %v2683_v49 = vadd.f32 %v4574_v4, %v2682_v48 }
 0x5d1   : > { %v3329_v28 = vpop.f32.mrf.mxu0 }
 0x5d2   : > { %2749 = vst [vmem:[%s4577_s22 + $0xa0] sm:$0xff] %v2683_v49  ;;  %v2694_v50 = vadd.f32 %v3329_v28, %v4574_v4 }
 0x5d3   : > { %v2685_v51 = vpop.f32.mrf.mxu0 }
 0x5d4   : > { %2752 = vst [vmem:[%s4577_s22 + $0xb8] sm:$0xff] %v2694_v50  ;;  %v2686_v52 = vadd.f32 %v4574_v4, %v2685_v51 }
 0x5d6   : > { %2750 = vst [vmem:[%s4577_s22 + $0xa8] sm:$0xff] %v2686_v52  ;;  %v3332_v53 = vpop.f32.mrf.mxu0 }
 0x5d7   : > { %v2707_v54 = vadd.f32 %v3332_v53, %v4574_v4 }
 0x5d8   : > { %v2698_v55 = vpop.f32.mrf.mxu0 }
 0x5d9   : > { %2755 = vst [vmem:[%s4577_s22 + $0xd0] sm:$0xff] %v2707_v54  ;;  %v2699_v56 = vadd.f32 %v4574_v4, %v2698_v55 }
 0x5da   : > { %v3333_v57 = vpop.f32.mrf.mxu0 }
 0x5db   : > { %2753 = vst [vmem:[%s4577_s22 + $0xc0] sm:$0xff] %v2699_v56  ;;  %v2710_v58 = vadd.f32 %v3333_v57, %v4574_v4 }
 0x5dc   : > { %v2701_v59 = vpop.f32.mrf.mxu0 }
 0x5dd   : > { %2756 = vst [vmem:[%s4577_s22 + $0xd8] sm:$0xff] %v2710_v58  ;;  %v2702_v60 = vadd.f32 %v4574_v4, %v2701_v59 }
 0x5de   : > { %v3336_v61 = vpop.f32.mrf.mxu0 }
 0x5df   : > { %2754 = vst [vmem:[%s4577_s22 + $0xc8] sm:$0xff] %v2702_v60  ;;  %v2723_v62 = vadd.f32 %v3336_v61, %v4574_v4 }
 0x5e0   : > { %v2714_v63 = vpop.f32.mrf.mxu0 }
 0x5e1   : > { %2759 = vst [vmem:[%s4577_s22 + $0xf0] sm:$0xff] %v2723_v62  ;;  %v2715_v0 = vadd.f32 %v4574_v4, %v2714_v63 }
 0x5e2   : > { %v3337_v1 = vpop.f32.mrf.mxu0 }
 0x5e3   : > { %2757 = vst [vmem:[%s4577_s22 + $0xe0] sm:$0xff] %v2715_v0  ;;  %v2726_v2 = vadd.f32 %v3337_v1, %v4574_v4 }
 0x5e4   : > { %v2717_v3 = vpop.f32.mrf.mxu0 }
 0x5e5   : > { %2760 = vst [vmem:[%s4577_s22 + $0xf8] sm:$0xff] %v2726_v2  ;;  %v2718_v5 = vadd.f32 %v4574_v4, %v2717_v3 }
 0x5e7   : > { %2758 = vst [vmem:[%s4577_s22 + $0xe8] sm:$0xff] %v2718_v5 }
 0x5e8   : > { %3980 = shalt.err (!%p3977_p10)
}
 0x5e9   : > { %s3981_s14 = scalar_lea.hbm %s4644_s16, 4096  ;;  %s3985_s30 = scalar_lea.hbm %s4726_s15, 8192 }
 0x5ea   : > { %p3982_p0 = scmp.ne.s32.totalorder %s4644_s16, %s3981_s14  ;;  %p3986_p1 = scmp.lt.s32.totalorder %s4644_s16, %s4726_s15 }
 0x5eb   : > { %p3987_p3 = scmp.lt.s32.totalorder %s3985_s30, %s3981_s14 }
 0x5ec   : > { %p3983_p2 = pnand %p3982_p0, %p4727_p12 }
 0x5ed   : > { %p3988_p6 = por %p3987_p3, %p3986_p1 }
 0x5ee   : > { %p3984_p9 = pneg %p3983_p2 }
 0x5f0   : > { %p3989_p11 = pnand %p3988_p6, %p3984_p9 }
 0x5f2   : > { %3992 = shalt.err (!%p3989_p11)
}
 0x5f3   : > { %s4037_s24 = smov 128   ;;  %s4038_s18 = smov 8  }
 0x5f4   : > { %3342 = dma.vmem_to_hbm [thread:$0]  (%p4727_p12), %s4646_s23, 4096, %s4644_s16, %s2762_s29, %s4037_s24, %s4037_s24, %s4038_s18  }
 0x5f5 PF: > { %s4728_s25 = sld [smem:[#allocation8_spill]]  ;;  %p4731_p4 = scmp.ge.s32.totalorder %s4031_s28, 2 }
 0x5f6   : > { %s4729_s27 = sld [smem:[#allocation12_spill]] }
 0x5fb   : > { %s2790_s17 = sand.u32 1, %s4728_s25  }
 0x5fc   : > { %p4730_p13 = scmp.ne.s32.totalorder %s4729_s27, 0  ;;  %s2791_s14 = scalar_lea.sflag [#allocation4], %s2790_s17 }
 0x5fe   : > { %p3349_p5 = pnand %p4731_p4, %p4730_p13 }
 0x600   : > { %p3350_p7 = pneg %p3349_p5 }
 0x602   : > { %4014 = dma.done.wait (%p3350_p7), %s2791_s14, 4096  }
 0x603   : > { %4016 = vsyncadd (%p3350_p7), %s2791_s14, 4294963200  ;;  %s4732_s28 = sld [smem:[#allocation10_spill]]  ;;  %s4735_s25 = smov %s4023_s26 }
 0x604   : > { %s4733_s22 = sld [smem:[#allocation9_spill]] }
 0x605   : > { %s4734_s27 = sld [smem:[#allocation11_spill]] }
 0x609   : > { %p26_p8 = scmp.ge.s32.totalorder %s4732_s28, 4  }
 0x60a   : > { %s4736_s26 = smov %s4733_s22 }
 0x60b   :  { %28 = sbr.rel (!%p26_p8) target bundleno = 7 (0x7), region = 117 }
 0x610   :  { %2796 = vsyncpa [#allocation3], 1 }
 0x611   :  { %2798 = vsyncpa [#allocation3 + $0x1], 1 }
 0x612   :  { %2799 = vsyncpa [#allocation4], 1 }
 0x613   :  { %2801 = vsyncpa [#allocation4 + $0x1], 1 }

</bundles_post_ra>
